<compile_context>
chip_gen: v6e
topology: v6e:2x2x1
jax: 0.10.0
libtpu: 0.0.40
codegen_flags: <defaults>
</compile_context>

<pallas_src>
import functools
import inspect
from typing import Dict, List, Optional, Union

import jax
import jax.numpy as jnp
from jax import lax
from jax.experimental import pallas as pl
from jax.experimental.pallas import tpu as pltpu


# ----------------------------------------------------------------------------
# Pallas tiled matmul kernel (the compute hot path of the wrapped op).
# ----------------------------------------------------------------------------
def _round_up(x: int, m: int) -> int:
    return ((x + m - 1) // m) * m


def _make_matmul_kernel(transpose_a: bool, transpose_b: bool, use_acc: bool):
    # Contraction dims of the *blocks* as laid out in VMEM (transpose folded in).
    a_contract = 0 if transpose_a else 1
    b_contract = 1 if transpose_b else 0
    dnums = (((a_contract,), (b_contract,)), ((), ()))

    if use_acc:
        # Non-f32 output: accumulate in an f32 VMEM scratch, cast on last k step.
        def kernel(a_ref, b_ref, o_ref, acc_ref):
            @pl.when(pl.program_id(2) == 0)
            def _():
                acc_ref[...] = jnp.zeros_like(acc_ref)

            acc_ref[...] += lax.dot_general(
                a_ref[...], b_ref[...], dnums, preferred_element_type=jnp.float32
            )

            @pl.when(pl.program_id(2) == pl.num_programs(2) - 1)
            def _():
                o_ref[...] = acc_ref[...].astype(o_ref.dtype)

        return kernel

    # f32 output: the output block is VMEM-resident across k (out index_map is
    # k-invariant), so accumulate directly into it — no scratch, no copy pass.
    def kernel(a_ref, b_ref, o_ref):
        @pl.when(pl.program_id(2) == 0)
        def _():
            o_ref[...] = jnp.zeros_like(o_ref)

        o_ref[...] += lax.dot_general(
            a_ref[...], b_ref[...], dnums, preferred_element_type=jnp.float32
        )

    return kernel


# Below this many flops, grid-launch + pipeline prologue dominates; use XLA dot.
_MIN_PALLAS_FLOPS = 2 * 128 * 256 * 256


@functools.partial(
    jax.jit,
    static_argnames=(
        "transpose_a", "transpose_b", "compute_dtype", "out_dtype", "tm", "tn", "tk",
    ),
)
def pallas_matmul(
    a: jnp.ndarray,
    b: jnp.ndarray,
    *,
    transpose_a: bool = False,
    transpose_b: bool = False,
    compute_dtype=jnp.bfloat16,
    out_dtype=jnp.float32,
    tm: int = 256,
    tn: int = 512,
    tk: int = 512,
):
    """(M,K) @ (K,N) -> (M,N); transposes are folded into the kernel layout."""
    assert a.ndim == 2 and b.ndim == 2
    M = a.shape[1] if transpose_a else a.shape[0]
    Ka = a.shape[0] if transpose_a else a.shape[1]
    Kb = b.shape[1] if transpose_b else b.shape[0]
    N = b.shape[0] if transpose_b else b.shape[1]
    assert Ka == Kb, (a.shape, b.shape, transpose_a, transpose_b)
    K = Ka

    a_c = a.astype(compute_dtype)
    b_c = b.astype(compute_dtype)

    if 2 * M * N * K < _MIN_PALLAS_FLOPS:
        # Tiny problem: a Pallas grid launch is pure overhead here.
        dnums = (((0 if transpose_a else 1,), (1 if transpose_b else 0,)), ((), ()))
        return lax.dot_general(
            a_c, b_c, dnums, preferred_element_type=jnp.float32
        ).astype(out_dtype)

    # --- Tile selection: big, lane-dense, (8,128)-legal, shrink for small dims.
    # When transpose_a, tm is the lane (last) dim of the A block -> 128-align it.
    m_align = 128 if transpose_a else 8
    tm = _round_up(min(tm, _round_up(M, m_align)), m_align)
    tn = _round_up(min(tn, _round_up(N, 128)), 128)
    tk = _round_up(min(tk, _round_up(K, 128)), 128)

    Mp, Np, Kp = _round_up(M, tm), _round_up(N, tn), _round_up(K, tk)

    # Zero-pad to tile multiples (K padding adds zeros to the sum; M/N padding
    # is sliced off afterwards).  No-op when already aligned.
    def _pad2(x, rows, cols):
        pr, pc = rows - x.shape[0], cols - x.shape[1]
        if pr or pc:
            x = jnp.pad(x, ((0, pr), (0, pc)))
        return x

    a_c = _pad2(a_c, Kp if transpose_a else Mp, Mp if transpose_a else Kp)
    b_c = _pad2(b_c, Np if transpose_b else Kp, Kp if transpose_b else Np)

    if transpose_a:
        a_spec = pl.BlockSpec((tk, tm), lambda i, j, k: (k, i))
    else:
        a_spec = pl.BlockSpec((tm, tk), lambda i, j, k: (i, k))
    if transpose_b:
        b_spec = pl.BlockSpec((tn, tk), lambda i, j, k: (j, k))
    else:
        b_spec = pl.BlockSpec((tk, tn), lambda i, j, k: (k, j))
    out_spec = pl.BlockSpec((tm, tn), lambda i, j, k: (i, j))

    use_acc = jnp.dtype(out_dtype) != jnp.dtype(jnp.float32)
    scratch_shapes = [pltpu.VMEM((tm, tn), jnp.float32)] if use_acc else []

    c_item = jnp.dtype(compute_dtype).itemsize
    o_item = jnp.dtype(out_dtype).itemsize
    vmem_needed = (
        2 * (tm * tk + tk * tn) * c_item  # double-buffered A, B tiles
        + 2 * tm * tn * o_item            # double-buffered output tile
        + (tm * tn * 4 if use_acc else 0)
    )
    # Modest explicit limit; safe on v7x (64 MiB physical) and v5e/v6e (128 MiB).
    vmem_limit = int(min(64 * 1024 * 1024, max(32 * 1024 * 1024, 2 * vmem_needed)))

    cost = pl.CostEstimate(
        flops=2 * M * N * K,
        transcendentals=0,
        bytes_accessed=int(
            a.size * a.dtype.itemsize + b.size * b.dtype.itemsize + M * N * o_item
        ),
    )

    out_padded = pl.pallas_call(
        _make_matmul_kernel(transpose_a, transpose_b, use_acc),
        out_shape=jax.ShapeDtypeStruct((Mp, Np), out_dtype),
        grid_spec=pltpu.PrefetchScalarGridSpec(
            num_scalar_prefetch=0,
            grid=(Mp // tm, Np // tn, Kp // tk),
            in_specs=[a_spec, b_spec],
            out_specs=out_spec,
            scratch_shapes=scratch_shapes,
        ),
        compiler_params=pltpu.CompilerParams(
            dimension_semantics=("parallel", "parallel", "arbitrary"),
            vmem_limit_bytes=vmem_limit,
        ),
        cost_estimate=cost,
    )(a_c, b_c)

    if Mp != M or Np != N:
        out_padded = out_padded[:M, :N]
    return out_padded


# ----------------------------------------------------------------------------
# Minimal Operation framework mirroring otx/mpa ov ops (JAX side).
# ----------------------------------------------------------------------------
class Operation:
    TYPE = "Operation"
    VERSION = 0

    def __init__(self, name: str, **attrs):
        self._name = name
        self._attrs = attrs
        self._shape = None

    def __call__(self, *args, **kwargs):
        return self.forward(*args, **kwargs)

    def forward(self):  # overridden
        raise NotImplementedError

    @property
    def type(self):
        return self.TYPE

    @property
    def version(self):
        return self.VERSION

    @property
    def name(self):
        return self._name

    @property
    def shape(self):
        return self._shape

    @property
    def attrs(self):
        return self._attrs


class ConstantV0(Operation):
    """Dependent op that simply returns a stored (deterministic) tensor."""

    TYPE = "Constant"
    VERSION = 0

    def __init__(self, name: str, data: jnp.ndarray):
        super().__init__(name)
        self._data = data
        self._shape = tuple(data.shape)

    def forward(self):
        return self._data


class MatMulV0(Operation):
    """OpenVINO-style MatMul; compute runs in the Pallas kernel."""

    TYPE = "MatMul"
    VERSION = 0

    def __init__(self, name: str, transpose_a: bool = False, transpose_b: bool = False):
        super().__init__(name, transpose_a=transpose_a, transpose_b=transpose_b)

    def forward(self, input_a, input_b):
        # Transposes are folded into the kernel's BlockSpecs / dot_general dims —
        # no jnp.swapaxes materialization in HBM.
        # TODO(synk): OpenVINO MatMul also allows batched/broadcast (>2-D) inputs;
        # this instantiation covers the 2-D activation x weight case only.
        return pallas_matmul(
            input_a,
            input_b,
            transpose_a=self._attrs["transpose_a"],
            transpose_b=self._attrs["transpose_b"],
        )


# ----------------------------------------------------------------------------
# OperationModule — faithful re-implementation of the PyTorch wrapper glue.
# ----------------------------------------------------------------------------
class OperationModule:
    def __init__(
        self,
        op: Operation,
        dependent_ops: Union[List[Optional[Operation]], Dict[str, Optional[Operation]]],
    ):
        self.op = op
        self._dependent_ops: Dict[str, Optional[Operation]] = {}

        spec = inspect.getfullargspec(op.forward)
        kwargs = spec.args[1:]

        self._dependents_with_defaults = []
        if spec.defaults:
            self._dependents_with_defaults = spec.args[-len(spec.defaults):]

        if isinstance(dependent_ops, list):
            assert len(dependent_ops) == len(kwargs)
            for dep, kwarg in zip(dependent_ops, kwargs):
                self._dependent_ops[kwarg] = dep
        elif isinstance(dependent_ops, dict):
            for kwarg in kwargs:
                self._dependent_ops[kwarg] = dependent_ops[kwarg]
        else:
            raise NotImplementedError

    def __call__(self, *args, **kwargs):
        return self.forward(*args, **kwargs)

    def forward(self, *args, **kwargs):
        inputs = {k: v() if v is not None else None for k, v in self._dependent_ops.items()}

        if args:
            empty_input_keys = [k for k, v in self._dependent_ops.items() if v is None]
            for key, val in zip(empty_input_keys, args):
                inputs[key] = val

        if kwargs:
            for key, val in kwargs.items():
                if inputs[key] is not None:
                    raise ValueError(f"duplicated key {key}")
                inputs[key] = val

        assert all(
            v is not None for k, v in inputs.items()
            if k not in self._dependents_with_defaults
        )

        return self.op(**inputs)

    @property
    def type(self):
        return self.op.type

    @property
    def version(self):
        return self.op.version

    @property
    def name(self):
        return self.op.name

    @property
    def shape(self):
        return self.op.shape

    @property
    def attrs(self):
        return self.op.attrs


# ----------------------------------------------------------------------------
# Demo / self-test.
# ----------------------------------------------------------------------------
if __name__ == "__main__":
    key = jax.random.PRNGKey(0)
    k_x1, k_w1, k_x2, k_w2, k_x3, k_w3 = jax.random.split(key, 6)

    # ---- Case 1: plain MatMul, ragged N (exercises padding + multi-tile grid).
    M1, K1, N1 = 256, 384, 640
    x1 = jax.random.normal(k_x1, (M1, K1), dtype=jnp.float32)
    w1 = jax.random.normal(k_w1, (K1, N1), dtype=jnp.float32) * 0.02

    matmul_op1 = MatMulV0("matmul_0", transpose_a=False, transpose_b=False)
    module1 = OperationModule(matmul_op1, {"input_a": None, "input_b": ConstantV0("w1", w1)})
    out1 = jax.block_until_ready(module1(x1))

    # ---- Case 2: transpose_b folded into the kernel (weight stored as (N, K)).
    M2, K2, N2 = 256, 512, 512
    x2 = jax.random.normal(k_x2, (M2, K2), dtype=jnp.float32)
    w2 = jax.random.normal(k_w2, (N2, K2), dtype=jnp.float32) * 0.02

    matmul_op2 = MatMulV0("matmul_1", transpose_a=False, transpose_b=True)
    module2 = OperationModule(matmul_op2, [None, ConstantV0("w2", w2)])
    out2 = jax.block_until_ready(module2(x2))

    # ---- Case 3: small shapes via kwargs path (exercises XLA-dot bypass + glue).
    M3, K3, N3 = 8, 32, 16
    x3 = jax.random.normal(k_x3, (M3, K3), dtype=jnp.float32)
    w3 = jax.random.normal(k_w3, (K3, N3), dtype=jnp.float32) * 0.1

    matmul_op3 = MatMulV0("matmul_2", transpose_a=False, transpose_b=False)
    module3 = OperationModule(matmul_op3, {"input_a": None, "input_b": ConstantV0("w3", w3)})
    out3 = jax.block_until_ready(module3(input_a=x3))

    # Correctness checks against references using the same bf16 compute dtype.
    ref1 = jnp.dot(
        x1.astype(jnp.bfloat16), w1.astype(jnp.bfloat16),
        preferred_element_type=jnp.float32,
    )
    ref2 = jnp.dot(
        x2.astype(jnp.bfloat16), w2.astype(jnp.bfloat16).T,
        preferred_element_type=jnp.float32,
    )
    ref3 = jnp.dot(
        x3.astype(jnp.bfloat16), w3.astype(jnp.bfloat16),
        preferred_element_type=jnp.float32,
    )

    assert out1.shape == (M1, N1)
    assert out2.shape == (M2, N2)
    assert out3.shape == (M3, N3)
    assert jnp.allclose(out1, ref1, atol=1e-2, rtol=1e-2)
    assert jnp.allclose(out2, ref2, atol=1e-2, rtol=1e-2)
    assert jnp.allclose(out3, ref3, atol=1e-2, rtol=1e-2)

    print("KERNEL_OK")
</pallas_src>

<mosaic_0001>
module attributes {stable_mosaic.version = 11 : i64} {
  func.func @kernel(%arg0: i32, %arg1: i32, %arg2: i32, %arg3: memref<256x384xbf16, #tpu.memory_space<vmem>>, %arg4: memref<384x512xbf16, #tpu.memory_space<vmem>>, %arg5: memref<256x512xf32, #tpu.memory_space<vmem>>) attributes {dimension_semantics = [#tpu.dimension_semantics<parallel>, #tpu.dimension_semantics<parallel>, #tpu.dimension_semantics<arbitrary>], iteration_bounds = array<i64: 1, 2, 1>, scalar_prefetch = 0 : i64, scratch_operands = 0 : i64, tpu.core_type = #tpu.core_type<tc>, window_params = [{transform_indices = @transform_0, window_bounds = array<i64: 256, 384>}, {transform_indices = @transform_1, window_bounds = array<i64: 384, 512>}, {transform_indices = @transform_2, window_bounds = array<i64: 256, 512>}]} {
    %c0_i32 = arith.constant 0 : i32
    %0 = arith.cmpi eq, %arg2, %c0_i32 : i32
    %1 = arith.extui %0 : i1 to i32
    %c0_i32_0 = arith.constant 0 : i32
    %2 = arith.cmpi ne, %1, %c0_i32_0 : i32
    scf.if %2 {
      %cst_8 = arith.constant 0.000000e+00 : f32
      %9 = vector.broadcast %cst_8 : f32 to vector<256x512xf32>
      %c0_9 = arith.constant 0 : index
      %c0_10 = arith.constant 0 : index
      %10 = vector.load %arg5[%c0_9, %c0_10] : memref<256x512xf32, #tpu.memory_space<vmem>>, vector<256x512xf32>
      tpu.vector_store %arg5[%c0_9, %c0_10], %9 {strides = array<i32>} : memref<256x512xf32, #tpu.memory_space<vmem>>, vector<256x512xf32>,
    } else {
    }
    %c0 = arith.constant 0 : index
    %c0_1 = arith.constant 0 : index
    %3 = vector.load %arg5[%c0, %c0_1] : memref<256x512xf32, #tpu.memory_space<vmem>>, vector<256x512xf32>
    %c0_2 = arith.constant 0 : index
    %c0_3 = arith.constant 0 : index
    %4 = vector.load %arg3[%c0_2, %c0_3] : memref<256x384xbf16, #tpu.memory_space<vmem>>, vector<256x384xbf16>
    %c0_4 = arith.constant 0 : index
    %c0_5 = arith.constant 0 : index
    %5 = vector.load %arg4[%c0_4, %c0_5] : memref<384x512xbf16, #tpu.memory_space<vmem>>, vector<384x512xbf16>
    %cst = arith.constant dense<0.000000e+00> : vector<256x512xf32>
    %6 = tpu.matmul %4, %5, %cst {dimension_numbers = #tpu.dot_dimension_numbers<[1], [0], [0], [1], [0, 0, 1, 1], [], []>} : vector<256x384xbf16>, vector<384x512xbf16>, vector<256x512xf32> -> vector<256x512xf32>
    %7 = arith.addf %3, %6 : vector<256x512xf32>
    %c0_6 = arith.constant 0 : index
    %c0_7 = arith.constant 0 : index
    %8 = vector.load %arg5[%c0_6, %c0_7] : memref<256x512xf32, #tpu.memory_space<vmem>>, vector<256x512xf32>
    tpu.vector_store %arg5[%c0_6, %c0_7], %7 {strides = array<i32>} : memref<256x512xf32, #tpu.memory_space<vmem>>, vector<256x512xf32>,
    return
  }
  func.func @transform_0(%arg0: i32, %arg1: i32, %arg2: i32) -> (i32, i32) {
    %c0_i32 = arith.constant 0 : i32
    return %arg0, %arg2 : i32, i32
  }
  func.func @transform_1(%arg0: i32, %arg1: i32, %arg2: i32) -> (i32, i32) {
    %c0_i32 = arith.constant 0 : i32
    return %arg2, %arg1 : i32, i32
  }
  func.func @transform_2(%arg0: i32, %arg1: i32, %arg2: i32) -> (i32, i32) {
    %c0_i32 = arith.constant 0 : i32
    return %arg0, %arg1 : i32, i32
  }
}

</mosaic_0001>

<bundles_post_ra>
// kernel: pallas_matmul.1
= control target key start
LH: loop header
LB: loop body
LE: loop exit
PB: predicated region body
PF: predicated region fallthrough
CT: control target
= control target key end

     0   :  { %s3467_s9 = smov 0   ;;  %s3469_s10 = smov 0   ;;  %s4987_s0 = inlined_call_operand.vmem [shape: bf16[256,384], index: 0, kind: input, shape index: {}]   ;;  %s4988_s1 = inlined_call_operand.vmem [shape: bf16[384,1024], index: 1, kind: input, shape index: {}]   ;;  %s4989_s2 = inlined_call_operand.vmem [shape: f32[256,1024], index: 2, kind: output, shape index: {}]  }
   0x1   :  { %s3471_s11 = smov 0   ;;  %s3473_s12 = smov 0  }
   0x2   :  { %s3475_s13 = smov 0  }
   0x3 LB: > { %s27_s14 = sadd.s32 1, %s3445_s12  ;;  %s2983_s15 = sadd.s32 4294967295, %s3449_s13   ;;  %s3449_s13 = sphi %s3475_s13, %s12_s13   ;;  %s3445_s12 = sphi %s3473_s12, %s4994_s12   ;;  %s3441_s11 = sphi %s3471_s11, %s4993_s11   ;;  %s3437_s10 = sphi %s3469_s10, %s4992_s10   ;;  %s3433_s9 = sphi %s3467_s9, %s4991_s9  }
   0x4   : > { %p29_p0 = scmp.ge.s32.totalorder %s27_s14, 2  ;;  %p75_p1 = scmp.ne.s32.totalorder %s3437_s10, %s3433_s9 }
   0x5   : > { %p76_p2 = scmp.eq.s32.totalorder %s3449_s13, 0  ;;  %p107_p4 = scmp.eq.s32.totalorder %s2983_s15, 1 }
   0x6   : > { %s4996_s14 = smov (%p29_p0, %s27_s14), 0  ;;  %s68_s17 = sadd.s32 1, %s3437_s10 }
   0x7   : > { %p77_p3 = por %p76_p2, %p75_p1  ;;  %s64_s16 = ssub.s32 %s3445_s12, %s4996_s14 }
   0x8   : > { %p66_p5 = scmp.eq.s32.totalorder %s64_s16, 0  ;;  %p3502_p6 = por %p107_p4, %p75_p1 }
   0x9   : > { %p2987_p7 = scmp.ge.s32.totalorder %s3449_s13, 2 }
   0xa   : > { %s3507_s19 = scalar_select %p66_p5, %s3437_s10, %s68_s17  }
   0xb   : > { %144 = sbr.rel (%p2987_p7) target bundleno = 68 (0x44), region = 20 }
  0x10   : > { %147 = sbr.rel (!%p77_p3) target bundleno = 68 (0x44), region = 24  ;;  %s149_s20 = sand.u32 (%p77_p3), 1, %s3437_s10  }
  0x11   : > { %s3141_s21 = sshll.u32 (%p77_p3), %s3445_s12, 4  ;;  %s3159_s22 = smul.u32 (%p77_p3), 768, %s149_s20 }
  0x12   : > { %s3515_s25 = scalar_lea.vmem (%p77_p3), %s4988_s1, %s3141_s21 }
  0x13   : > { %v170_v0 = vld [vmem:[%s3515_s25] sm:$0xff] (%p77_p3)  ;;  %v172_v1 = vld [vmem:[%s3515_s25 + $0x8] sm:$0xff] (%p77_p3)  ;;  %s3523_s26 = scalar_lea.vmem (%p77_p3), [#allocation2], %s3159_s22 }
  0x14   : > { %v174_v2 = vld [vmem:[%s3515_s25 + $0x20] sm:$0xff] (%p77_p3)  ;;  %v176_v3 = vld [vmem:[%s3515_s25 + $0x28] sm:$0xff] (%p77_p3)  ;;  %171 = vst [vmem:[%s3523_s26] sm:$0xff] (%p77_p3), %v170_v0  ;;  %173 = vst [vmem:[%s3523_s26 + $0x8] sm:$0xff] (%p77_p3), %v172_v1 }
  0x15   : > { %v178_v4 = vld [vmem:[%s3515_s25 + $0x40] sm:$0xff]  ;;  %v180_v5 = vld [vmem:[%s3515_s25 + $0x48] sm:$0xff]  ;;  %175 = vst [vmem:[%s3523_s26 + $0x10] sm:$0xff] %v174_v2  ;;  %177 = vst [vmem:[%s3523_s26 + $0x18] sm:$0xff] %v176_v3 }
  0x16   : > { %179 = vst [vmem:[%s3523_s26 + $0x20] sm:$0xff] %v178_v4  ;;  %181 = vst [vmem:[%s3523_s26 + $0x28] sm:$0xff] %v180_v5  ;;  %v182_v6 = vld [vmem:[%s3515_s25 + $0x60] sm:$0xff]  ;;  %v184_v7 = vld [vmem:[%s3515_s25 + $0x68] sm:$0xff] }
  0x17   : > { %v186_v8 = vld [vmem:[%s3515_s25 + $0x80] sm:$0xff]  ;;  %183 = vst [vmem:[%s3523_s26 + $0x30] sm:$0xff] %v182_v6  ;;  %185 = vst [vmem:[%s3523_s26 + $0x38] sm:$0xff] %v184_v7  ;;  %v188_v9 = vld [vmem:[%s3515_s25 + $0x88] sm:$0xff] }
  0x18   : > { %187 = vst [vmem:[%s3523_s26 + $0x40] sm:$0xff] %v186_v8  ;;  %v190_v10 = vld [vmem:[%s3515_s25 + $0xa0] sm:$0xff]  ;;  %v192_v11 = vld [vmem:[%s3515_s25 + $0xa8] sm:$0xff]  ;;  %189 = vst [vmem:[%s3523_s26 + $0x48] sm:$0xff] %v188_v9 }
  0x19   : > { %191 = vst [vmem:[%s3523_s26 + $0x50] sm:$0xff] %v190_v10  ;;  %193 = vst [vmem:[%s3523_s26 + $0x58] sm:$0xff] %v192_v11  ;;  %v194_v12 = vld [vmem:[%s3515_s25 + $0xc0] sm:$0xff]  ;;  %v196_v13 = vld [vmem:[%s3515_s25 + $0xc8] sm:$0xff] }
  0x1a   : > { %v198_v14 = vld [vmem:[%s3515_s25 + $0xe0] sm:$0xff]  ;;  %195 = vst [vmem:[%s3523_s26 + $0x60] sm:$0xff] %v194_v12  ;;  %197 = vst [vmem:[%s3523_s26 + $0x68] sm:$0xff] %v196_v13  ;;  %v200_v15 = vld [vmem:[%s3515_s25 + $0xe8] sm:$0xff] }
  0x1b   : > { %199 = vst [vmem:[%s3523_s26 + $0x70] sm:$0xff] %v198_v14  ;;  %v202_v16 = vld [vmem:[%s3515_s25 + $0x100] sm:$0xff]  ;;  %v204_v17 = vld [vmem:[%s3515_s25 + $0x108] sm:$0xff]  ;;  %201 = vst [vmem:[%s3523_s26 + $0x78] sm:$0xff] %v200_v15 }
  0x1c   : > { %203 = vst [vmem:[%s3523_s26 + $0x80] sm:$0xff] %v202_v16  ;;  %205 = vst [vmem:[%s3523_s26 + $0x88] sm:$0xff] %v204_v17  ;;  %v206_v18 = vld [vmem:[%s3515_s25 + $0x120] sm:$0xff]  ;;  %v208_v19 = vld [vmem:[%s3515_s25 + $0x128] sm:$0xff] }
  0x1d   : > { %v210_v20 = vld [vmem:[%s3515_s25 + $0x140] sm:$0xff]  ;;  %207 = vst [vmem:[%s3523_s26 + $0x90] sm:$0xff] %v206_v18  ;;  %209 = vst [vmem:[%s3523_s26 + $0x98] sm:$0xff] %v208_v19  ;;  %v212_v21 = vld [vmem:[%s3515_s25 + $0x148] sm:$0xff] }
  0x1e   : > { %211 = vst [vmem:[%s3523_s26 + $0xa0] sm:$0xff] %v210_v20  ;;  %v214_v22 = vld [vmem:[%s3515_s25 + $0x160] sm:$0xff]  ;;  %v216_v23 = vld [vmem:[%s3515_s25 + $0x168] sm:$0xff]  ;;  %213 = vst [vmem:[%s3523_s26 + $0xa8] sm:$0xff] %v212_v21 }
  0x1f   : > { %215 = vst [vmem:[%s3523_s26 + $0xb0] sm:$0xff] %v214_v22  ;;  %217 = vst [vmem:[%s3523_s26 + $0xb8] sm:$0xff] %v216_v23  ;;  %v218_v24 = vld [vmem:[%s3515_s25 + $0x180] sm:$0xff]  ;;  %v220_v25 = vld [vmem:[%s3515_s25 + $0x188] sm:$0xff] }
  0x20   : > { %v222_v26 = vld [vmem:[%s3515_s25 + $0x1a0] sm:$0xff]  ;;  %219 = vst [vmem:[%s3523_s26 + $0xc0] sm:$0xff] %v218_v24  ;;  %221 = vst [vmem:[%s3523_s26 + $0xc8] sm:$0xff] %v220_v25  ;;  %v224_v27 = vld [vmem:[%s3515_s25 + $0x1a8] sm:$0xff] }
  0x21   : > { %223 = vst [vmem:[%s3523_s26 + $0xd0] sm:$0xff] %v222_v26  ;;  %v226_v28 = vld [vmem:[%s3515_s25 + $0x1c0] sm:$0xff]  ;;  %v228_v29 = vld [vmem:[%s3515_s25 + $0x1c8] sm:$0xff]  ;;  %225 = vst [vmem:[%s3523_s26 + $0xd8] sm:$0xff] %v224_v27 }
  0x22   : > { %227 = vst [vmem:[%s3523_s26 + $0xe0] sm:$0xff] %v226_v28  ;;  %229 = vst [vmem:[%s3523_s26 + $0xe8] sm:$0xff] %v228_v29  ;;  %v230_v30 = vld [vmem:[%s3515_s25 + $0x1e0] sm:$0xff]  ;;  %v232_v31 = vld [vmem:[%s3515_s25 + $0x1e8] sm:$0xff] }
  0x23   : > { %v234_v32 = vld [vmem:[%s3515_s25 + $0x200] sm:$0xff]  ;;  %231 = vst [vmem:[%s3523_s26 + $0xf0] sm:$0xff] %v230_v30  ;;  %233 = vst [vmem:[%s3523_s26 + $0xf8] sm:$0xff] %v232_v31  ;;  %v236_v33 = vld [vmem:[%s3515_s25 + $0x208] sm:$0xff] }
  0x24   : > { %235 = vst [vmem:[%s3523_s26 + $0x100] sm:$0xff] %v234_v32  ;;  %v238_v34 = vld [vmem:[%s3515_s25 + $0x220] sm:$0xff]  ;;  %v240_v35 = vld [vmem:[%s3515_s25 + $0x228] sm:$0xff]  ;;  %237 = vst [vmem:[%s3523_s26 + $0x108] sm:$0xff] %v236_v33 }
  0x25   : > { %239 = vst [vmem:[%s3523_s26 + $0x110] sm:$0xff] %v238_v34  ;;  %241 = vst [vmem:[%s3523_s26 + $0x118] sm:$0xff] %v240_v35  ;;  %v242_v36 = vld [vmem:[%s3515_s25 + $0x240] sm:$0xff]  ;;  %v244_v37 = vld [vmem:[%s3515_s25 + $0x248] sm:$0xff] }
  0x26   : > { %v246_v38 = vld [vmem:[%s3515_s25 + $0x260] sm:$0xff]  ;;  %243 = vst [vmem:[%s3523_s26 + $0x120] sm:$0xff] %v242_v36  ;;  %245 = vst [vmem:[%s3523_s26 + $0x128] sm:$0xff] %v244_v37  ;;  %v248_v39 = vld [vmem:[%s3515_s25 + $0x268] sm:$0xff] }
  0x27   : > { %247 = vst [vmem:[%s3523_s26 + $0x130] sm:$0xff] %v246_v38  ;;  %v250_v40 = vld [vmem:[%s3515_s25 + $0x280] sm:$0xff]  ;;  %v252_v41 = vld [vmem:[%s3515_s25 + $0x288] sm:$0xff]  ;;  %249 = vst [vmem:[%s3523_s26 + $0x138] sm:$0xff] %v248_v39 }
  0x28   : > { %251 = vst [vmem:[%s3523_s26 + $0x140] sm:$0xff] %v250_v40  ;;  %253 = vst [vmem:[%s3523_s26 + $0x148] sm:$0xff] %v252_v41  ;;  %v254_v42 = vld [vmem:[%s3515_s25 + $0x2a0] sm:$0xff]  ;;  %v256_v43 = vld [vmem:[%s3515_s25 + $0x2a8] sm:$0xff] }
  0x29   : > { %v258_v44 = vld [vmem:[%s3515_s25 + $0x2c0] sm:$0xff]  ;;  %255 = vst [vmem:[%s3523_s26 + $0x150] sm:$0xff] %v254_v42  ;;  %257 = vst [vmem:[%s3523_s26 + $0x158] sm:$0xff] %v256_v43  ;;  %v260_v45 = vld [vmem:[%s3515_s25 + $0x2c8] sm:$0xff] }
  0x2a   : > { %259 = vst [vmem:[%s3523_s26 + $0x160] sm:$0xff] %v258_v44  ;;  %v262_v46 = vld [vmem:[%s3515_s25 + $0x2e0] sm:$0xff]  ;;  %v264_v47 = vld [vmem:[%s3515_s25 + $0x2e8] sm:$0xff]  ;;  %261 = vst [vmem:[%s3523_s26 + $0x168] sm:$0xff] %v260_v45 }
  0x2b   : > { %263 = vst [vmem:[%s3523_s26 + $0x170] sm:$0xff] %v262_v46  ;;  %265 = vst [vmem:[%s3523_s26 + $0x178] sm:$0xff] %v264_v47  ;;  %v266_v48 = vld [vmem:[%s3515_s25 + $0x300] sm:$0xff]  ;;  %v268_v49 = vld [vmem:[%s3515_s25 + $0x308] sm:$0xff] }
  0x2c   : > { %v270_v50 = vld [vmem:[%s3515_s25 + $0x320] sm:$0xff]  ;;  %267 = vst [vmem:[%s3523_s26 + $0x180] sm:$0xff] %v266_v48  ;;  %269 = vst [vmem:[%s3523_s26 + $0x188] sm:$0xff] %v268_v49  ;;  %v272_v51 = vld [vmem:[%s3515_s25 + $0x328] sm:$0xff] }
  0x2d   : > { %271 = vst [vmem:[%s3523_s26 + $0x190] sm:$0xff] %v270_v50  ;;  %v274_v52 = vld [vmem:[%s3515_s25 + $0x340] sm:$0xff]  ;;  %v276_v53 = vld [vmem:[%s3515_s25 + $0x348] sm:$0xff]  ;;  %273 = vst [vmem:[%s3523_s26 + $0x198] sm:$0xff] %v272_v51 }
  0x2e   : > { %275 = vst [vmem:[%s3523_s26 + $0x1a0] sm:$0xff] %v274_v52  ;;  %277 = vst [vmem:[%s3523_s26 + $0x1a8] sm:$0xff] %v276_v53  ;;  %v278_v54 = vld [vmem:[%s3515_s25 + $0x360] sm:$0xff]  ;;  %v280_v55 = vld [vmem:[%s3515_s25 + $0x368] sm:$0xff] }
  0x2f   : > { %v282_v56 = vld [vmem:[%s3515_s25 + $0x380] sm:$0xff]  ;;  %279 = vst [vmem:[%s3523_s26 + $0x1b0] sm:$0xff] %v278_v54  ;;  %281 = vst [vmem:[%s3523_s26 + $0x1b8] sm:$0xff] %v280_v55  ;;  %v284_v57 = vld [vmem:[%s3515_s25 + $0x388] sm:$0xff] }
  0x30   : > { %283 = vst [vmem:[%s3523_s26 + $0x1c0] sm:$0xff] %v282_v56  ;;  %v286_v58 = vld [vmem:[%s3515_s25 + $0x3a0] sm:$0xff]  ;;  %v288_v59 = vld [vmem:[%s3515_s25 + $0x3a8] sm:$0xff]  ;;  %285 = vst [vmem:[%s3523_s26 + $0x1c8] sm:$0xff] %v284_v57 }
  0x31   : > { %287 = vst [vmem:[%s3523_s26 + $0x1d0] sm:$0xff] %v286_v58  ;;  %289 = vst [vmem:[%s3523_s26 + $0x1d8] sm:$0xff] %v288_v59  ;;  %v290_v60 = vld [vmem:[%s3515_s25 + $0x3c0] sm:$0xff]  ;;  %v292_v61 = vld [vmem:[%s3515_s25 + $0x3c8] sm:$0xff] }
  0x32   : > { %v294_v62 = vld [vmem:[%s3515_s25 + $0x3e0] sm:$0xff]  ;;  %291 = vst [vmem:[%s3523_s26 + $0x1e0] sm:$0xff] %v290_v60  ;;  %293 = vst [vmem:[%s3523_s26 + $0x1e8] sm:$0xff] %v292_v61  ;;  %v296_v63 = vld [vmem:[%s3515_s25 + $0x3e8] sm:$0xff] }
  0x33   : > { %295 = vst [vmem:[%s3523_s26 + $0x1f0] sm:$0xff] %v294_v62  ;;  %v298_v0 = vld [vmem:[%s3515_s25 + $0x400] sm:$0xff]  ;;  %v300_v1 = vld [vmem:[%s3515_s25 + $0x408] sm:$0xff]  ;;  %297 = vst [vmem:[%s3523_s26 + $0x1f8] sm:$0xff] %v296_v63 }
  0x34   : > { %299 = vst [vmem:[%s3523_s26 + $0x200] sm:$0xff] %v298_v0  ;;  %301 = vst [vmem:[%s3523_s26 + $0x208] sm:$0xff] %v300_v1  ;;  %v302_v2 = vld [vmem:[%s3515_s25 + $0x420] sm:$0xff]  ;;  %v304_v3 = vld [vmem:[%s3515_s25 + $0x428] sm:$0xff] }
  0x35   : > { %v306_v4 = vld [vmem:[%s3515_s25 + $0x440] sm:$0xff]  ;;  %303 = vst [vmem:[%s3523_s26 + $0x210] sm:$0xff] %v302_v2  ;;  %305 = vst [vmem:[%s3523_s26 + $0x218] sm:$0xff] %v304_v3  ;;  %v308_v5 = vld [vmem:[%s3515_s25 + $0x448] sm:$0xff] }
  0x36   : > { %307 = vst [vmem:[%s3523_s26 + $0x220] sm:$0xff] %v306_v4  ;;  %v310_v6 = vld [vmem:[%s3515_s25 + $0x460] sm:$0xff]  ;;  %v312_v7 = vld [vmem:[%s3515_s25 + $0x468] sm:$0xff]  ;;  %309 = vst [vmem:[%s3523_s26 + $0x228] sm:$0xff] %v308_v5 }
  0x37   : > { %311 = vst [vmem:[%s3523_s26 + $0x230] sm:$0xff] %v310_v6  ;;  %313 = vst [vmem:[%s3523_s26 + $0x238] sm:$0xff] %v312_v7  ;;  %v314_v8 = vld [vmem:[%s3515_s25 + $0x480] sm:$0xff]  ;;  %v316_v9 = vld [vmem:[%s3515_s25 + $0x488] sm:$0xff] }
  0x38   : > { %v318_v10 = vld [vmem:[%s3515_s25 + $0x4a0] sm:$0xff]  ;;  %315 = vst [vmem:[%s3523_s26 + $0x240] sm:$0xff] %v314_v8  ;;  %317 = vst [vmem:[%s3523_s26 + $0x248] sm:$0xff] %v316_v9  ;;  %v320_v11 = vld [vmem:[%s3515_s25 + $0x4a8] sm:$0xff] }
  0x39   : > { %319 = vst [vmem:[%s3523_s26 + $0x250] sm:$0xff] %v318_v10  ;;  %v322_v12 = vld [vmem:[%s3515_s25 + $0x4c0] sm:$0xff]  ;;  %v324_v13 = vld [vmem:[%s3515_s25 + $0x4c8] sm:$0xff]  ;;  %321 = vst [vmem:[%s3523_s26 + $0x258] sm:$0xff] %v320_v11 }
  0x3a   : > { %323 = vst [vmem:[%s3523_s26 + $0x260] sm:$0xff] %v322_v12  ;;  %325 = vst [vmem:[%s3523_s26 + $0x268] sm:$0xff] %v324_v13  ;;  %v326_v14 = vld [vmem:[%s3515_s25 + $0x4e0] sm:$0xff]  ;;  %v328_v15 = vld [vmem:[%s3515_s25 + $0x4e8] sm:$0xff] }
  0x3b   : > { %v330_v16 = vld [vmem:[%s3515_s25 + $0x500] sm:$0xff]  ;;  %327 = vst [vmem:[%s3523_s26 + $0x270] sm:$0xff] %v326_v14  ;;  %329 = vst [vmem:[%s3523_s26 + $0x278] sm:$0xff] %v328_v15  ;;  %v332_v17 = vld [vmem:[%s3515_s25 + $0x508] sm:$0xff] }
  0x3c   : > { %331 = vst [vmem:[%s3523_s26 + $0x280] sm:$0xff] %v330_v16  ;;  %v334_v18 = vld [vmem:[%s3515_s25 + $0x520] sm:$0xff]  ;;  %v336_v19 = vld [vmem:[%s3515_s25 + $0x528] sm:$0xff]  ;;  %333 = vst [vmem:[%s3523_s26 + $0x288] sm:$0xff] %v332_v17 }
  0x3d   : > { %335 = vst [vmem:[%s3523_s26 + $0x290] sm:$0xff] %v334_v18  ;;  %337 = vst [vmem:[%s3523_s26 + $0x298] sm:$0xff] %v336_v19  ;;  %v338_v20 = vld [vmem:[%s3515_s25 + $0x540] sm:$0xff]  ;;  %v340_v21 = vld [vmem:[%s3515_s25 + $0x548] sm:$0xff] }
  0x3e   : > { %v342_v22 = vld [vmem:[%s3515_s25 + $0x560] sm:$0xff]  ;;  %339 = vst [vmem:[%s3523_s26 + $0x2a0] sm:$0xff] %v338_v20  ;;  %341 = vst [vmem:[%s3523_s26 + $0x2a8] sm:$0xff] %v340_v21  ;;  %v344_v23 = vld [vmem:[%s3515_s25 + $0x568] sm:$0xff] }
  0x3f   : > { %343 = vst [vmem:[%s3523_s26 + $0x2b0] sm:$0xff] %v342_v22  ;;  %v346_v24 = vld [vmem:[%s3515_s25 + $0x580] sm:$0xff]  ;;  %v348_v25 = vld [vmem:[%s3515_s25 + $0x588] sm:$0xff]  ;;  %345 = vst [vmem:[%s3523_s26 + $0x2b8] sm:$0xff] %v344_v23 }
  0x40   : > { %347 = vst [vmem:[%s3523_s26 + $0x2c0] sm:$0xff] %v346_v24  ;;  %349 = vst [vmem:[%s3523_s26 + $0x2c8] sm:$0xff] %v348_v25  ;;  %v350_v26 = vld [vmem:[%s3515_s25 + $0x5a0] sm:$0xff]  ;;  %v352_v27 = vld [vmem:[%s3515_s25 + $0x5a8] sm:$0xff] }
  0x41   : > { %v354_v28 = vld [vmem:[%s3515_s25 + $0x5c0] sm:$0xff]  ;;  %351 = vst [vmem:[%s3523_s26 + $0x2d0] sm:$0xff] %v350_v26  ;;  %353 = vst [vmem:[%s3523_s26 + $0x2d8] sm:$0xff] %v352_v27  ;;  %v356_v29 = vld [vmem:[%s3515_s25 + $0x5c8] sm:$0xff] }
  0x42   : > { %355 = vst [vmem:[%s3523_s26 + $0x2e0] sm:$0xff] %v354_v28  ;;  %v358_v30 = vld [vmem:[%s3515_s25 + $0x5e0] sm:$0xff]  ;;  %v360_v31 = vld [vmem:[%s3515_s25 + $0x5e8] sm:$0xff]  ;;  %357 = vst [vmem:[%s3523_s26 + $0x2e8] sm:$0xff] %v356_v29 }
  0x43   : > { %359 = vst [vmem:[%s3523_s26 + $0x2f0] sm:$0xff] %v358_v30  ;;  %361 = vst [vmem:[%s3523_s26 + $0x2f8] sm:$0xff] %v360_v31 }
  0x44 PF: > { %p2990_p8 = scmp.ge.s32.totalorder %s3449_s13, 1  ;;  %p366_p9 = scmp.lt.s32.totalorder %s3449_s13, 3 }
  0x46   : > { %p367_p10 = pnand %p2990_p8, %p366_p9 }
  0x47   : > { %s373_s27 = sand.u32 (!%p367_p10), 1, %s3433_s9  }
  0x48   : > { %370 = sbr.rel (%p367_p10) target bundleno = 617 (0x269), region = 47  ;;  %s2991_s5 = sshll.u32 (!%p367_p10), %s373_s27, 10 }
  0x49   : > { %s3160_s28 = smul.u32 (!%p367_p10), 768, %s373_s27  ;;  %s4248_s9 = scalar_lea.vmem (!%p367_p10), [#allocation3], %s2991_s5 }
  0x4b   : > { %s3717_s29 = scalar_lea.vmem (!%p367_p10), [#allocation2], %s3160_s28 }
  0x4d   : > { %v3451_v32 = vmov 0   ;;  %v3203_v33 = vld [vmem:[%s3717_s29 + $0xe4] ss:$16 sps:$4 sm:$0xff]   ;;  %v3207_v35 = vld [vmem:[%s3717_s29 + $0xe0] ss:$16 sps:$4 sm:$0xff]   ;;  %s3142_s27 = sshll.u32 (%p3502_p6), %s3441_s11, 5 }
  0x4e   : > { %1801 = vmatprep.mubr.bf16.mxu1 %v3451_v32  ;;  %v3205_v34 = vld [vmem:[%s3717_s29 + $0x2e4] ss:$16 sps:$4 sm:$0xff]   ;;  %1576 = vmatprep.subr.bf16.mxu0 %v3203_v33  ;;  %v3208_v36 = vld [vmem:[%s3717_s29 + $0x2e0] ss:$16 sps:$4 sm:$0xff]   ;;  %v3256_v2 = vld [vmem:[%s3717_s29 + $0xec] ss:$16 sps:$4 sm:$0xff]  }
  0x4f   : > { %1769 = vmatprep.subr.bf16.mxu1 %v3205_v34  ;;  %v3209_v37 = vld [vmem:[%s3717_s29 + $0xc4] ss:$16 sps:$4 sm:$0xff]   ;;  %1577 = vmatpush1.bf16.msra.mxu0 %v3207_v35  ;;  %v3213_v39 = vld [vmem:[%s3717_s29 + $0xc0] ss:$16 sps:$4 sm:$0xff]   ;;  %v3254_v4 = vld [vmem:[%s3717_s29 + $0xe8] ss:$16 sps:$4 sm:$0xff]  }
  0x50   : > { %1770 = vmatpush1.bf16.msra.mxu1 %v3208_v36  ;;  %v3211_v38 = vld [vmem:[%s3717_s29 + $0x2c4] ss:$16 sps:$4 sm:$0xff]   ;;  %1578 = vmatprep.subr.bf16.mxu0 %v3209_v37  ;;  %v3214_v40 = vld [vmem:[%s3717_s29 + $0x2c0] ss:$16 sps:$4 sm:$0xff]   ;;  %v3266_v7 = vld [vmem:[%s3717_s29 + $0xcc] ss:$16 sps:$4 sm:$0xff]  }
  0x51   : > { %1771 = vmatprep.subr.bf16.mxu1 %v3211_v38  ;;  %v3215_v41 = vld [vmem:[%s3717_s29 + $0xa4] ss:$16 sps:$4 sm:$0xff]   ;;  %v3219_v43 = vld [vmem:[%s3717_s29 + $0xa0] ss:$16 sps:$4 sm:$0xff]   ;;  %v3264_v10 = vld [vmem:[%s3717_s29 + $0xc8] ss:$16 sps:$4 sm:$0xff]  }
  0x52   : > { %v3217_v42 = vld [vmem:[%s3717_s29 + $0x2a4] ss:$16 sps:$4 sm:$0xff]   ;;  %v3220_v44 = vld [vmem:[%s3717_s29 + $0x2a0] ss:$16 sps:$4 sm:$0xff]   ;;  %v3276_v11 = vld [vmem:[%s3717_s29 + $0xac] ss:$16 sps:$4 sm:$0xff]  }
  0x53   : > { %1579 = vmatpush1.bf16.msra.mxu0 %v3213_v39  ;;  %v3221_v45 = vld [vmem:[%s3717_s29 + $0x84] ss:$16 sps:$4 sm:$0xff]   ;;  %v3225_v47 = vld [vmem:[%s3717_s29 + $0x80] ss:$16 sps:$4 sm:$0xff]   ;;  %v3274_v16 = vld [vmem:[%s3717_s29 + $0xa8] ss:$16 sps:$4 sm:$0xff]  }
  0x54   : > { %1772 = vmatpush1.bf16.msra.mxu1 %v3214_v40  ;;  %1580 = vmatprep.subr.bf16.mxu0 %v3215_v41  ;;  %v3223_v46 = vld [vmem:[%s3717_s29 + $0x284] ss:$16 sps:$4 sm:$0xff]   ;;  %v3226_v48 = vld [vmem:[%s3717_s29 + $0x280] ss:$16 sps:$4 sm:$0xff]   ;;  %v3286_v17 = vld [vmem:[%s3717_s29 + $0x8c] ss:$16 sps:$4 sm:$0xff]  }
  0x55   : > { %1773 = vmatprep.subr.bf16.mxu1 %v3217_v42  ;;  %v3227_v49 = vld [vmem:[%s3717_s29 + $0x64] ss:$16 sps:$4 sm:$0xff]   ;;  %v3231_v51 = vld [vmem:[%s3717_s29 + $0x60] ss:$16 sps:$4 sm:$0xff]   ;;  %v3284_v20 = vld [vmem:[%s3717_s29 + $0x88] ss:$16 sps:$4 sm:$0xff]  }
  0x56   : > { %v3229_v50 = vld [vmem:[%s3717_s29 + $0x264] ss:$16 sps:$4 sm:$0xff]   ;;  %v3232_v52 = vld [vmem:[%s3717_s29 + $0x260] ss:$16 sps:$4 sm:$0xff]   ;;  %v3297_v21 = vld [vmem:[%s3717_s29 + $0x6c] ss:$16 sps:$4 sm:$0xff]  }
  0x57   : > { %1581 = vmatpush1.bf16.msra.mxu0 %v3219_v43  ;;  %v3233_v53 = vld [vmem:[%s3717_s29 + $0x44] ss:$16 sps:$4 sm:$0xff]   ;;  %v3237_v55 = vld [vmem:[%s3717_s29 + $0x40] ss:$16 sps:$4 sm:$0xff]   ;;  %v3295_v25 = vld [vmem:[%s3717_s29 + $0x68] ss:$16 sps:$4 sm:$0xff]  }
  0x58   : > { %1774 = vmatpush1.bf16.msra.mxu1 %v3220_v44  ;;  %1582 = vmatprep.subr.bf16.mxu0 %v3221_v45  ;;  %v3235_v54 = vld [vmem:[%s3717_s29 + $0x244] ss:$16 sps:$4 sm:$0xff]   ;;  %v3238_v56 = vld [vmem:[%s3717_s29 + $0x240] ss:$16 sps:$4 sm:$0xff]   ;;  %v3307_v26 = vld [vmem:[%s3717_s29 + $0x4c] ss:$16 sps:$4 sm:$0xff]  }
  0x59   : > { %1775 = vmatprep.subr.bf16.mxu1 %v3223_v46  ;;  %v3239_v57 = vld [vmem:[%s3717_s29 + $0x24] ss:$16 sps:$4 sm:$0xff]   ;;  %v3243_v59 = vld [vmem:[%s3717_s29 + $0x20] ss:$16 sps:$4 sm:$0xff]   ;;  %v3305_v29 = vld [vmem:[%s3717_s29 + $0x48] ss:$16 sps:$4 sm:$0xff]  }
  0x5a   : > { %v3241_v58 = vld [vmem:[%s3717_s29 + $0x224] ss:$16 sps:$4 sm:$0xff]   ;;  %v3244_v60 = vld [vmem:[%s3717_s29 + $0x220] ss:$16 sps:$4 sm:$0xff]   ;;  %v3314_v30 = vld [vmem:[%s3717_s29 + $0x2c] ss:$16 sps:$4 sm:$0xff]  }
  0x5b   : > { %1583 = vmatpush1.bf16.msra.mxu0 %v3225_v47  ;;  %v3245_v61 = vld [vmem:[%s3717_s29 + $0x4] ss:$16 sps:$4 sm:$0xff]   ;;  %v3249_v63 = vld [vmem:[%s3717_s29] ss:$16 sps:$4 sm:$0xff]   ;;  %v3312_v35 = vld [vmem:[%s3717_s29 + $0x28] ss:$16 sps:$4 sm:$0xff]  }
  0x5c   : > { %1776 = vmatpush1.bf16.msra.mxu1 %v3226_v48  ;;  %1584 = vmatprep.subr.bf16.mxu0 %v3227_v49  ;;  %v3247_v62 = vld [vmem:[%s3717_s29 + $0x204] ss:$16 sps:$4 sm:$0xff]   ;;  %v3250_v0 = vld [vmem:[%s3717_s29 + $0x200] ss:$16 sps:$4 sm:$0xff]   ;;  %v3324_v36 = vld [vmem:[%s3717_s29 + $0xc] ss:$16 sps:$4 sm:$0xff]  }
  0x5d   : > { %1777 = vmatprep.subr.bf16.mxu1 %v3229_v50  ;;  %v3251_v1 = vld [vmem:[%s3717_s29 + $0x1e4] ss:$16 sps:$4 sm:$0xff]   ;;  %v3257_v5 = vld [vmem:[%s3717_s29 + $0x1e0] ss:$16 sps:$4 sm:$0xff]   ;;  %v3822_v39 = vld [vmem:[%s3717_s29 + $0x2ec] ss:$16 sps:$4 sm:$0xff]  }
  0x5e   : > { %v3756_v3 = vld [vmem:[%s4987_s0 + $0x8] ss:$12 sps:$4 sm:$0xff]   ;;  %v3260_v8 = vld [vmem:[%s3717_s29 + $0x1c0] ss:$16 sps:$4 sm:$0xff]   ;;  %v3792_v22 = vld [vmem:[%s4987_s0 + $0x38] ss:$12 sps:$4 sm:$0xff]  }
  0x5f   : > { %1585 = vmatpush1.bf16.msra.mxu0 %v3231_v51  ;;  %v3258_v6 = vld [vmem:[%s3717_s29 + $0x1c4] ss:$16 sps:$4 sm:$0xff]   ;;  %v3771_v12 = vld [vmem:[%s4987_s0 + $0x20] ss:$12 sps:$4 sm:$0xff]   ;;  %v3807_v31 = vld [vmem:[%s4987_s0 + $0x50] ss:$12 sps:$4 sm:$0xff]  }
  0x60   : > { %1778 = vmatpush1.bf16.msra.mxu1 %v3232_v52  ;;  %1586 = vmatprep.subr.bf16.mxu0 %v3233_v53  ;;  %v3261_v9 = vld [vmem:[%s3717_s29 + $0x1a4] ss:$16 sps:$4 sm:$0xff]   ;;  %v3267_v14 = vld [vmem:[%s3717_s29 + $0x1a0] ss:$16 sps:$4 sm:$0xff]   ;;  %v3322_v40 = vld [vmem:[%s3717_s29 + $0x8] ss:$16 sps:$4 sm:$0xff]  }
  0x61   : > { %1779 = vmatprep.subr.bf16.mxu1 %v3235_v54  ;;  %v3776_v13 = vld [vmem:[%s4987_s0 + $0x4] ss:$12 sps:$4 sm:$0xff]   ;;  %v3819_v38 = vld [vmem:[%s4987_s0] ss:$12 sps:$4 sm:$0xff]   ;;  %v3829_v42 = vld [vmem:[%s4987_s0 + $0x68] ss:$12 sps:$4 sm:$0xff]  }
  0x62   : > { %v3268_v15 = vld [vmem:[%s3717_s29 + $0x184] ss:$16 sps:$4 sm:$0xff]   ;;  %1608 = vmatprep.mubr.bf16.mxu0 %v3776_v13  ;;  %v3270_v18 = vld [vmem:[%s3717_s29 + $0x180] ss:$16 sps:$4 sm:$0xff]   ;;  %v3331_v41 = vld [vmem:[%s3717_s29 + $0x1ec] ss:$16 sps:$4 sm:$0xff]  }
  0x63   : > { %1587 = vmatpush1.bf16.msra.mxu0 %v3237_v55  ;;  %v3271_v19 = vld [vmem:[%s3717_s29 + $0x164] ss:$16 sps:$4 sm:$0xff]   ;;  %v3277_v23 = vld [vmem:[%s3717_s29 + $0x160] ss:$16 sps:$4 sm:$0xff]   ;;  %v3832_v43 = vld [vmem:[%s3717_s29 + $0x2e8] ss:$16 sps:$4 sm:$0xff]  }
  0x64   : > { %1780 = vmatpush1.bf16.msra.mxu1 %v3238_v56  ;;  %1588 = vmatprep.subr.bf16.mxu0 %v3239_v57  ;;  %v3278_v24 = vld [vmem:[%s3717_s29 + $0x144] ss:$16 sps:$4 sm:$0xff]   ;;  %v3280_v27 = vld [vmem:[%s3717_s29 + $0x140] ss:$16 sps:$4 sm:$0xff]   ;;  %v3837_v44 = vld [vmem:[%s4987_s0 + $0x1c] ss:$12 sps:$4 sm:$0xff]  }
  0x65   : > { %1781 = vmatprep.subr.bf16.mxu1 %v3241_v58  ;;  %v3281_v28 = vld [vmem:[%s3717_s29 + $0x124] ss:$16 sps:$4 sm:$0xff]   ;;  %v3287_v33 = vld [vmem:[%s3717_s29 + $0x120] ss:$16 sps:$4 sm:$0xff]   ;;  %v3841_v45 = vld [vmem:[%s3717_s29 + $0x2cc] ss:$16 sps:$4 sm:$0xff]  }
  0x66   : > { %v3288_v34 = vld [vmem:[%s3717_s29 + $0x104] ss:$16 sps:$4 sm:$0xff]   ;;  %v3290_v37 = vld [vmem:[%s3717_s29 + $0x100] ss:$16 sps:$4 sm:$0xff]   ;;  %v3329_v46 = vld [vmem:[%s3717_s29 + $0x1e8] ss:$16 sps:$4 sm:$0xff]  }
  0x67   : > { %1589 = vmatpush1.bf16.msra.mxu0 %v3243_v59  ;;  %v3341_v47 = vld [vmem:[%s3717_s29 + $0x1cc] ss:$16 sps:$4 sm:$0xff]   ;;  %v3850_v48 = vld [vmem:[%s3717_s29 + $0x2c8] ss:$16 sps:$4 sm:$0xff]   ;;  %v3871_v53 = vld [vmem:[%s4987_s0 + $0x34] ss:$12 sps:$4 sm:$0xff]  }
  0x68   : > { %1782 = vmatpush1.bf16.msra.mxu1 %v3244_v60  ;;  %1590 = vmatprep.subr.bf16.mxu0 %v3245_v61  ;;  %v3856_v49 = vld [vmem:[%s4987_s0 + $0x18] ss:$12 sps:$4 sm:$0xff]   ;;  %v3860_v50 = vld [vmem:[%s3717_s29 + $0x2ac] ss:$16 sps:$4 sm:$0xff]  }
  0x69   : > { %1783 = vmatprep.subr.bf16.mxu1 %v3247_v62  ;;  %v3339_v51 = vld [vmem:[%s3717_s29 + $0x1c8] ss:$16 sps:$4 sm:$0xff]   ;;  %v3866_v52 = vld [vmem:[%s4987_s0 + $0x80] ss:$12 sps:$4 sm:$0xff]   ;;  %v3891_v59 = vld [vmem:[%s4987_s0 + $0x30] ss:$12 sps:$4 sm:$0xff]  }
  0x6a   : > { %v3875_v54 = vld [vmem:[%s3717_s29 + $0x2a8] ss:$16 sps:$4 sm:$0xff]   ;;  %v3348_v56 = vld [vmem:[%s3717_s29 + $0x1ac] ss:$16 sps:$4 sm:$0xff]  }
  0x6b   : > { %1591 = vmatpush1.bf16.msra.mxu0 %v3249_v63  ;;  %v3346_v55 = vld [vmem:[%s3717_s29 + $0x1a8] ss:$16 sps:$4 sm:$0xff]   ;;  %v3881_v57 = vld [vmem:[%s3717_s29 + $0x28c] ss:$16 sps:$4 sm:$0xff]  }
  0x6c   : > { %1784 = vmatpush1.bf16.msra.mxu1 %v3250_v0  ;;  %1592 = vmatprep.subr.bf16.mxu0 %v3251_v1  ;;  %v3358_v58 = vld [vmem:[%s3717_s29 + $0x18c] ss:$16 sps:$4 sm:$0xff]   ;;  %v3896_v60 = vld [vmem:[%s4987_s0 + $0x98] ss:$12 sps:$4 sm:$0xff]  }
  0x6d   : > { %1962 = vmatprep.subr.bf16.mxu1 %v3256_v2  ;;  %v3900_v61 = vld [vmem:[%s3717_s29 + $0x288] ss:$16 sps:$4 sm:$0xff]   ;;  %v3905_v63 = vld [vmem:[%s3717_s29 + $0x26c] ss:$16 sps:$4 sm:$0xff]  }
  0x6e   : > { %v3356_v62 = vld [vmem:[%s3717_s29 + $0x188] ss:$16 sps:$4 sm:$0xff]   ;;  %v3365_v1 = vld [vmem:[%s3717_s29 + $0x16c] ss:$16 sps:$4 sm:$0xff]  }
  0x6f   : > { %1802 = vmatmul.mubr.bf16.vlgmr.msra.gmra.mxu1 %v3756_v3  ;;  %1593 = vmatpush2.bf16.msra.mxu0 %v3257_v5  ;;  %v3910_v0 = vld [vmem:[%s4987_s0 + $0x4c] ss:$12 sps:$4 sm:$0xff]  }
  0x70   : > { %1963 = vmatpush1.bf16.msra.mxu1 %v3254_v4  ;;  %1594 = vmatprep.subr.bf16.mxu0 %v3258_v6  ;;  %v3915_v2 = vld [vmem:[%s3717_s29 + $0x268] ss:$16 sps:$4 sm:$0xff]   ;;  %v3375_v5 = vld [vmem:[%s3717_s29 + $0x14c] ss:$16 sps:$4 sm:$0xff]  }
  0x71   : > { %1811 = vmatprep.mubr.bf16.mxu1 %v3451_v32  ;;  %1964 = vmatprep.subr.bf16.mxu1 %v3266_v7  ;;  %v3363_v4 = vld [vmem:[%s3717_s29 + $0x168] ss:$16 sps:$4 sm:$0xff]  }
  0x72   : > { %v3373_v6 = vld [vmem:[%s3717_s29 + $0x148] ss:$16 sps:$4 sm:$0xff]  }
  0x73   : > { %1595 = vmatpush2.bf16.msra.mxu0 %v3260_v8  ;;  %v3927_v7 = vld [vmem:[%s3717_s29 + $0x248] ss:$16 sps:$4 sm:$0xff]   ;;  %v3930_v8 = vld [vmem:[%s3717_s29 + $0x24c] ss:$16 sps:$4 sm:$0xff]  }
  0x74   : > { %1965 = vmatpush1.bf16.msra.mxu1 %v3264_v10  ;;  %1596 = vmatprep.subr.bf16.mxu0 %v3261_v9  ;;  %v3935_v9 = vld [vmem:[%s4987_s0 + $0x48] ss:$12 sps:$4 sm:$0xff]   ;;  %v3940_v10 = vld [vmem:[%s4987_s0 + $0xb0] ss:$12 sps:$4 sm:$0xff]  }
  0x75   : > { %1966 = vmatprep.subr.bf16.mxu1 %v3276_v11  ;;  %v3945_v11 = vld [vmem:[%s4987_s0 + $0x64] ss:$12 sps:$4 sm:$0xff]  }
  0x77   : > { %1812 = vmatmul.mubr.bf16.gmra.mxu1 %v3771_v12  ;;  %1597 = vmatpush2.bf16.msra.mxu0 %v3267_v14  ;;  %v3382_v14 = vld [vmem:[%s3717_s29 + $0x12c] ss:$16 sps:$4 sm:$0xff]  }
  0x78   : > { %1821 = vmatprep.mubr.bf16.mxu1 %v3451_v32  ;;  %1598 = vmatprep.subr.bf16.mxu0 %v3268_v15  ;;  %v3380_v15 = vld [vmem:[%s3717_s29 + $0x128] ss:$16 sps:$4 sm:$0xff]  }
  0x79   : > { %1967 = vmatpush1.bf16.msra.mxu1 %v3274_v16  ;;  %v3392_v16 = vld [vmem:[%s3717_s29 + $0x10c] ss:$16 sps:$4 sm:$0xff]  }
  0x7a   : > { %1968 = vmatprep.subr.bf16.mxu1 %v3286_v17  ;;  %v3957_v17 = vld [vmem:[%s3717_s29 + $0x228] ss:$16 sps:$4 sm:$0xff]  }
  0x7b   : > { %1599 = vmatpush2.bf16.msra.mxu0 %v3270_v18  ;;  %v3960_v18 = vld [vmem:[%s3717_s29 + $0x22c] ss:$16 sps:$4 sm:$0xff]  }
  0x7c   : > { %1600 = vmatprep.subr.bf16.mxu0 %v3271_v19  ;;  %v3965_v19 = vld [vmem:[%s4987_s0 + $0x60] ss:$12 sps:$4 sm:$0xff]  }
  0x7d   : > { %1969 = vmatpush1.bf16.msra.mxu1 %v3284_v20  ;;  %v3390_v20 = vld [vmem:[%s3717_s29 + $0x108] ss:$16 sps:$4 sm:$0xff]  }
  0x7e   : > { %1970 = vmatprep.subr.bf16.mxu1 %v3297_v21  ;;  %v3972_v21 = vld [vmem:[%s4987_s0 + $0xc8] ss:$12 sps:$4 sm:$0xff]  }
  0x7f   : > { %1822 = vmatmul.mubr.bf16.gmra.mxu1 %v3792_v22  ;;  %1601 = vmatpush2.bf16.msra.mxu0 %v3277_v23  ;;  %v3978_v23 = vld [vmem:[%s4987_s0 + $0x7c] ss:$12 sps:$4 sm:$0xff]  }
  0x80   : > { %1831 = vmatprep.mubr.bf16.mxu1 %v3451_v32  ;;  %1602 = vmatprep.subr.bf16.mxu0 %v3278_v24  ;;  %v3981_v24 = vld [vmem:[%s3717_s29 + $0x20c] ss:$16 sps:$4 sm:$0xff]  }
  0x81   : > { %1971 = vmatpush1.bf16.msra.mxu1 %v3295_v25  ;;  %v3984_v25 = vld [vmem:[%s3717_s29 + $0x208] ss:$16 sps:$4 sm:$0xff]   ;;  %s4717_s29 = scalar_lea.vmem (%p3502_p6), %s4989_s2, %s3142_s27 }
  0x82   : > { %1972 = vmatprep.subr.bf16.mxu1 %v3307_v26  ;;  %v3996_v26 = vld [vmem:[%s4987_s0 + $0x78] ss:$12 sps:$4 sm:$0xff]  }
  0x83   : > { %1603 = vmatpush2.bf16.msra.mxu0 %v3280_v27  ;;  %v4001_v27 = vld [vmem:[%s4987_s0 + $0xe0] ss:$12 sps:$4 sm:$0xff]  }
  0x84   : > { %1604 = vmatprep.subr.bf16.mxu0 %v3281_v28  ;;  %v4006_v28 = vld [vmem:[%s4987_s0 + $0x94] ss:$12 sps:$4 sm:$0xff]  }
  0x85   : > { %1973 = vmatpush1.bf16.msra.mxu1 %v3305_v29  ;;  %v4015_v29 = vld [vmem:[%s4987_s0 + $0x90] ss:$12 sps:$4 sm:$0xff]  }
  0x86   : > { %1974 = vmatprep.subr.bf16.mxu1 %v3314_v30  ;;  %v4020_v30 = vld [vmem:[%s4987_s0 + $0xf8] ss:$12 sps:$4 sm:$0xff]  }
  0x87   : > { %1832 = vmatmul.mubr.bf16.gmra.mxu1 %v3807_v31  ;;  %1605 = vmatpush2.bf16.msra.mxu0 %v3287_v33  ;;  %v4025_v33 = vld [vmem:[%s4987_s0 + $0xac] ss:$12 sps:$4 sm:$0xff]  }
  0x88   : > { %1841 = vmatprep.mubr.bf16.mxu1 %v3451_v32  ;;  %1606 = vmatprep.subr.bf16.mxu0 %v3288_v34  ;;  %v4034_v34 = vld [vmem:[%s4987_s0 + $0xa8] ss:$12 sps:$4 sm:$0xff]  }
  0x89   : > { %1975 = vmatpush1.bf16.msra.mxu1 %v3312_v35  ;;  %v4039_v35 = vld [vmem:[%s4987_s0 + $0x110] ss:$12 sps:$4 sm:$0xff]  }
  0x8a   : > { %1976 = vmatprep.subr.bf16.mxu1 %v3324_v36  ;;  %v4044_v36 = vld [vmem:[%s4987_s0 + $0xc4] ss:$12 sps:$4 sm:$0xff]  }
  0x8b   : > { %1607 = vmatpush2.bf16.msra.mxu0 %v3290_v37  ;;  %v4053_v37 = vld [vmem:[%s4987_s0 + $0xc0] ss:$12 sps:$4 sm:$0xff]  }
  0x8c   : > { %2155 = vmatprep.subr.bf16.mxu0 %v3822_v39 }
  0x8d   : > { %1977 = vmatpush1.bf16.msra.mxu1 %v3322_v40  ;;  %v4063_v40 = vld [vmem:[%s4987_s0 + $0xdc] ss:$12 sps:$4 sm:$0xff]  }
  0x8e   : > { %1978 = vmatprep.subr.bf16.mxu1 %v3331_v41  ;;  %1609 = vmatmul.mubr.bf16.vlgmr.msra.gmra.mxu0 %v3819_v38  ;;  %v4072_v41 = vld [vmem:[%s4987_s0 + $0xd8] ss:$12 sps:$4 sm:$0xff]  }
  0x8f   : > { %1842 = vmatmul.mubr.bf16.gmra.mxu1 %v3829_v42  ;;  %2156 = vmatpush1.bf16.msra.mxu0 %v3832_v43 }
  0x90   : > { %1618 = vmatprep.mubr.bf16.mxu0 %v3837_v44  ;;  %1851 = vmatprep.mubr.bf16.mxu1 %v3451_v32 }
  0x91   : > { %2157 = vmatprep.subr.bf16.mxu0 %v3841_v45  ;;  %1979 = vmatpush2.bf16.msra.mxu1 %v3329_v46  ;;  %v4077_v46 = vld [vmem:[%s4987_s0 + $0x140] ss:$12 sps:$4 sm:$0xff]  }
  0x92   : > { %1980 = vmatprep.subr.bf16.mxu1 %v3341_v47  ;;  %v4082_v47 = vld [vmem:[%s4987_s0 + $0xf4] ss:$12 sps:$4 sm:$0xff]  }
  0x93   : > { %2158 = vmatpush1.bf16.msra.mxu0 %v3850_v48 }
  0x94   : > { %2159 = vmatprep.subr.bf16.mxu0 %v3860_v50 }
  0x95   : > { %1981 = vmatpush2.bf16.msra.mxu1 %v3339_v51  ;;  %v4091_v51 = vld [vmem:[%s4987_s0 + $0xf0] ss:$12 sps:$4 sm:$0xff]  }
  0x96   : > { %1619 = vmatmul.mubr.bf16.gmra.mxu0 %v3856_v49  ;;  %1982 = vmatprep.subr.bf16.mxu1 %v3348_v56  ;;  %v4101_v56 = vld [vmem:[%s4987_s0 + $0x10c] ss:$12 sps:$4 sm:$0xff]  }
  0x97   : > { %1852 = vmatmul.mubr.bf16.gmra.mxu1 %v3866_v52  ;;  %1628 = vmatprep.mubr.bf16.mxu0 %v3871_v53 }
  0x98   : > { %1861 = vmatprep.mubr.bf16.mxu1 %v3451_v32  ;;  %2160 = vmatpush1.bf16.msra.mxu0 %v3875_v54 }
  0x99   : > { %2161 = vmatprep.subr.bf16.mxu0 %v3881_v57  ;;  %1983 = vmatpush2.bf16.msra.mxu1 %v3346_v55  ;;  %v4096_v55 = vld [vmem:[%s4987_s0 + $0x158] ss:$12 sps:$4 sm:$0xff]  }
  0x9a   : > { %1984 = vmatprep.subr.bf16.mxu1 %v3358_v58  ;;  %v4110_v58 = vld [vmem:[%s4987_s0 + $0x108] ss:$12 sps:$4 sm:$0xff]  }
  0x9c   : > { %2162 = vmatpush1.bf16.msra.mxu0 %v3900_v61 }
  0x9d   : > { %1985 = vmatpush2.bf16.msra.mxu1 %v3356_v62  ;;  %2163 = vmatprep.subr.bf16.mxu0 %v3905_v63  ;;  %v4115_v62 = vld [vmem:[%s4987_s0 + $0x170] ss:$12 sps:$4 sm:$0xff]  }
  0x9e   : > { %1629 = vmatmul.mubr.bf16.gmra.mxu0 %v3891_v59  ;;  %1986 = vmatprep.subr.bf16.mxu1 %v3365_v1  ;;  %v4120_v1 = vld [vmem:[%s4987_s0 + $0x124] ss:$12 sps:$4 sm:$0xff]  }
  0x9f   : > { %1862 = vmatmul.mubr.bf16.gmra.mxu1 %v3896_v60  ;;  %1638 = vmatprep.mubr.bf16.mxu0 %v3910_v0 }
  0xa0   : > { %1871 = vmatprep.mubr.bf16.mxu1 %v3451_v32  ;;  %2164 = vmatpush1.bf16.msra.mxu0 %v3915_v2 }
  0xa1   : > { %1987 = vmatpush2.bf16.msra.mxu1 %v3363_v4  ;;  %2165 = vmatprep.subr.bf16.mxu0 %v3930_v8  ;;  %v4129_v4 = vld [vmem:[%s4987_s0 + $0x120] ss:$12 sps:$4 sm:$0xff]  }
  0xa2   : > { %1988 = vmatprep.subr.bf16.mxu1 %v3375_v5  ;;  %v4134_v5 = vld [vmem:[%s4987_s0 + $0x13c] ss:$12 sps:$4 sm:$0xff]  }
  0xa4   : > { %2166 = vmatpush1.bf16.msra.mxu0 %v3927_v7 }
  0xa5   : > { %1989 = vmatpush2.bf16.msra.mxu1 %v3373_v6  ;;  %2167 = vmatprep.subr.bf16.mxu0 %v3960_v18  ;;  %v4150_v6 = vld [vmem:[%s4987_s0 + $0x154] ss:$12 sps:$4 sm:$0xff]  }
  0xa6   : > { %1639 = vmatmul.mubr.bf16.gmra.mxu0 %v3935_v9  ;;  %1990 = vmatprep.subr.bf16.mxu1 %v3382_v14 }
  0xa7   : > { %1872 = vmatmul.mubr.bf16.gmra.mxu1 %v3940_v10  ;;  %1648 = vmatprep.mubr.bf16.mxu0 %v3945_v11 }
  0xa8   : > { %1881 = vmatprep.mubr.bf16.mxu1 %v3451_v32  ;;  %2168 = vmatpush1.bf16.msra.mxu0 %v3957_v17 }
  0xa9   : > { %1991 = vmatpush2.bf16.msra.mxu1 %v3380_v15  ;;  %2169 = vmatprep.subr.bf16.mxu0 %v3981_v24 }
  0xaa   : > { %1992 = vmatprep.subr.bf16.mxu1 %v3392_v16 }
  0xac   : > { %2170 = vmatpush1.bf16.msra.mxu0 %v3984_v25 }
  0xad   : > { %1993 = vmatpush2.bf16.msra.mxu1 %v3390_v20 }
  0xae   : > { %1649 = vmatmul.mubr.bf16.gmra.mxu0 %v3965_v19  ;;  %3143 = vmatprep.subr.bf16.mxu1 %v3822_v39  ;;  %v4058_v39 = vld [vmem:[%s4987_s0 + $0x128] ss:$12 sps:$4 sm:$0xff]  }
  0xaf   : > { %1882 = vmatmul.mubr.bf16.gmra.mxu1 %v3972_v21  ;;  %1658 = vmatprep.mubr.bf16.mxu0 %v3978_v23 }
  0xb0   : > { %1891 = vmatprep.mubr.bf16.mxu1 %v3451_v32 }
  0xb6   : > { %1659 = vmatmul.mubr.bf16.gmra.mxu0 %v3996_v26 }
  0xb7   : > { %1892 = vmatmul.mubr.bf16.gmra.mxu1 %v4001_v27  ;;  %1668 = vmatprep.mubr.bf16.mxu0 %v4006_v28 }
  0xb8   : > { %1901 = vmatprep.mubr.bf16.mxu1 %v3451_v32 }
  0xbe   : > { %1669 = vmatmul.mubr.bf16.gmra.mxu0 %v4015_v29 }
  0xbf   : > { %1902 = vmatmul.mubr.bf16.gmra.mxu1 %v4020_v30  ;;  %1678 = vmatprep.mubr.bf16.mxu0 %v4025_v33 }
  0xc0   : > { %1911 = vmatprep.mubr.bf16.mxu1 %v3451_v32 }
  0xc6   : > { %1679 = vmatmul.mubr.bf16.gmra.mxu0 %v4034_v34 }
  0xc7   : > { %1912 = vmatmul.mubr.bf16.gmra.mxu1 %v4039_v35  ;;  %1688 = vmatprep.mubr.bf16.mxu0 %v4044_v36 }
  0xc8   : > { %1921 = vmatprep.mubr.bf16.mxu1 %v3451_v32 }
  0xce   : > { %1689 = vmatmul.mubr.bf16.gmra.mxu0 %v4053_v37 }
  0xcf   : > { %1922 = vmatmul.mubr.bf16.gmra.mxu1 %v4058_v39  ;;  %1698 = vmatprep.mubr.bf16.mxu0 %v4063_v40 }
  0xd0   : > { %1931 = vmatprep.mubr.bf16.mxu1 %v3451_v32 }
  0xd6   : > { %1699 = vmatmul.mubr.bf16.gmra.mxu0 %v4072_v41 }
  0xd7   : > { %1932 = vmatmul.mubr.bf16.gmra.mxu1 %v4077_v46  ;;  %1708 = vmatprep.mubr.bf16.mxu0 %v4082_v47 }
  0xd8   : > { %1941 = vmatprep.mubr.bf16.mxu1 %v3451_v32 }
  0xde   : > { %1709 = vmatmul.mubr.bf16.gmra.mxu0 %v4091_v51 }
  0xdf   : > { %1942 = vmatmul.mubr.bf16.gmra.mxu1 %v4096_v55  ;;  %1718 = vmatprep.mubr.bf16.mxu0 %v4101_v56 }
  0xe0   : > { %1951 = vmatprep.mubr.bf16.mxu1 %v3451_v32 }
  0xe6   : > { %1719 = vmatmul.mubr.bf16.gmra.mxu0 %v4110_v58 }
  0xe7   : > { %1952 = vmatmul.mubr.bf16.gmra.mxu1 %v4115_v62  ;;  %1728 = vmatprep.mubr.bf16.mxu0 %v4120_v1 }
  0xe8   : > { %1994 = vmatprep.mubr.bf16.mxu1 %v3776_v13  ;;  %v4145_v13 = vld [vmem:[%s4987_s0 + $0x138] ss:$12 sps:$4 sm:$0xff]  }
  0xee   : > { %1729 = vmatmul.mubr.bf16.gmra.mxu0 %v4129_v4 }
  0xef   : > { %1995 = vmatmul.mubr.bf16.vlgmr.msra.gmra.mxu1 %v3819_v38  ;;  %1738 = vmatprep.mubr.bf16.mxu0 %v4134_v5  ;;  %v4163_v38 = vld [vmem:[%s4987_s0 + $0x150] ss:$12 sps:$4 sm:$0xff]  }
  0xf0   : > { %3151 = vmatpush1.bf16.msra.mxu1 %v3832_v43  ;;  %2004 = vmatprep.mubr.bf16.mxu1 %v3837_v44  ;;  %v4168_v43 = vld [vmem:[%s4987_s0 + $0x16c] ss:$12 sps:$4 sm:$0xff]   ;;  %v4181_v44 = vld [vmem:[%s4987_s0 + $0x168] ss:$12 sps:$4 sm:$0xff]  }
  0xf1   : > { %3144 = vmatprep.subr.bf16.mxu1 %v3841_v45 }
  0xf4   : > { %3152 = vmatpush1.bf16.msra.mxu1 %v3850_v48 }
  0xf5   : > { %3145 = vmatprep.subr.bf16.mxu1 %v3860_v50 }
  0xf6   : > { %1739 = vmatmul.mubr.bf16.gmra.mxu0 %v4145_v13 }
  0xf7   : > { %2005 = vmatmul.mubr.bf16.gmra.mxu1 %v3856_v49  ;;  %1748 = vmatprep.mubr.bf16.mxu0 %v4150_v6 }
  0xf8   : > { %2014 = vmatprep.mubr.bf16.mxu1 %v3871_v53  ;;  %3153 = vmatpush1.bf16.msra.mxu1 %v3875_v54 }
  0xf9   : > { %3146 = vmatprep.subr.bf16.mxu1 %v3881_v57 }
  0xfc   : > { %3154 = vmatpush1.bf16.msra.mxu1 %v3900_v61 }
  0xfd   : > { %3147 = vmatprep.subr.bf16.mxu1 %v3905_v63 }
  0xfe   : > { %1749 = vmatmul.mubr.bf16.gmra.mxu0 %v4163_v38 }
  0xff   : > { %2015 = vmatmul.mubr.bf16.gmra.mxu1 %v3891_v59  ;;  %1758 = vmatprep.mubr.bf16.mxu0 %v4168_v43 }
 0x100   : > { %2024 = vmatprep.mubr.bf16.mxu1 %v3910_v0  ;;  %3155 = vmatpush1.bf16.msra.mxu1 %v3915_v2 }
 0x101   : > { %3148 = vmatprep.subr.bf16.mxu1 %v3930_v8 }
 0x104   : > { %3156 = vmatpush1.bf16.msra.mxu1 %v3927_v7 }
 0x105   : > { %3149 = vmatprep.subr.bf16.mxu1 %v3960_v18 }
 0x106   : > { %1759 = vmatmul.mubr.bf16.gmra.mxu0 %v4181_v44 }
 0x107   : > { %2025 = vmatmul.mubr.bf16.gmra.mxu1 %v3935_v9  ;;  %2187 = vmatprep.mubr.bf16.mxu0 %v3451_v32 }
 0x108   : > { %2034 = vmatprep.mubr.bf16.mxu1 %v3945_v11  ;;  %3157 = vmatpush1.bf16.msra.mxu1 %v3957_v17 }
 0x109   : > { %3150 = vmatprep.subr.bf16.mxu1 %v3981_v24 }
 0x10c   : > { %3158 = vmatpush1.bf16.msra.mxu1 %v3984_v25 }
 0x10e   : > { %2188 = vmatmul.mubr.bf16.vlgmr.msra.gmra.mxu0 %v3756_v3 }
 0x10f   : > { %2035 = vmatmul.mubr.bf16.gmra.mxu1 %v3965_v19  ;;  %2197 = vmatprep.mubr.bf16.mxu0 %v3451_v32 }
 0x110   : > { %2044 = vmatprep.mubr.bf16.mxu1 %v3978_v23 }
 0x116   : > { %2198 = vmatmul.mubr.bf16.gmra.mxu0 %v3771_v12 }
 0x117   : > { %2045 = vmatmul.mubr.bf16.gmra.mxu1 %v3996_v26  ;;  %2207 = vmatprep.mubr.bf16.mxu0 %v3451_v32 }
 0x118   : > { %2054 = vmatprep.mubr.bf16.mxu1 %v4006_v28 }
 0x11e   : > { %2208 = vmatmul.mubr.bf16.gmra.mxu0 %v3792_v22 }
 0x11f   : > { %2055 = vmatmul.mubr.bf16.gmra.mxu1 %v4015_v29  ;;  %2217 = vmatprep.mubr.bf16.mxu0 %v3451_v32 }
 0x120   : > { %2064 = vmatprep.mubr.bf16.mxu1 %v4025_v33 }
 0x126   : > { %2218 = vmatmul.mubr.bf16.gmra.mxu0 %v3807_v31 }
 0x127   : > { %2065 = vmatmul.mubr.bf16.gmra.mxu1 %v4034_v34  ;;  %2227 = vmatprep.mubr.bf16.mxu0 %v3451_v32 }
 0x128   : > { %2074 = vmatprep.mubr.bf16.mxu1 %v4044_v36 }
 0x12e   : > { %2228 = vmatmul.mubr.bf16.gmra.mxu0 %v3829_v42 }
 0x12f   : > { %v1803_v3 = vpop.f32.mrf.mxu1  ;;  %2075 = vmatmul.mubr.bf16.gmra.mxu1 %v4053_v37  ;;  %2237 = vmatprep.mubr.bf16.mxu0 %v3451_v32 }
 0x130   : > { %2084 = vmatprep.mubr.bf16.mxu1 %v4063_v40 }
 0x131   : > { %v1805_v12 = vpop.f32.mrf.mxu1 }
 0x133   : > { %v1807_v22 = vpop.f32.mrf.mxu1 }
 0x135   : > { %v1809_v45 = vpop.f32.mrf.mxu1 }
 0x136   : > { %2238 = vmatmul.mubr.bf16.gmra.mxu0 %v3866_v52 }
 0x137   : > { %v1813_v48 = vpop.f32.mrf.mxu1  ;;  %2085 = vmatmul.mubr.bf16.gmra.mxu1 %v4072_v41  ;;  %2247 = vmatprep.mubr.bf16.mxu0 %v3451_v32 }
 0x138   : > { %2094 = vmatprep.mubr.bf16.mxu1 %v4082_v47 }
 0x139   : > { %v1815_v31 = vpop.f32.mrf.mxu1 }
 0x13b   : > { %v1817_v49 = vpop.f32.mrf.mxu1 }
 0x13d   : > { %v1819_v50 = vpop.f32.mrf.mxu1 }
 0x13e   : > { %2248 = vmatmul.mubr.bf16.gmra.mxu0 %v3896_v60 }
 0x13f   : > { %v1823_v42 = vpop.f32.mrf.mxu1  ;;  %2095 = vmatmul.mubr.bf16.gmra.mxu1 %v4091_v51  ;;  %2257 = vmatprep.mubr.bf16.mxu0 %v3451_v32 }
 0x140   : > { %2104 = vmatprep.mubr.bf16.mxu1 %v4101_v56 }
 0x141   : > { %v1825_v53 = vpop.f32.mrf.mxu1 }
 0x143   : > { %v4220_v54 = vpop.f32.mrf.mxu1 }
 0x145   : > { %v4222_v52 = vpop.f32.mrf.mxu1 }
 0x146   : > { %2258 = vmatmul.mubr.bf16.gmra.mxu0 %v3940_v10 }
 0x147   : > { %v4224_v57 = vpop.f32.mrf.mxu1  ;;  %2105 = vmatmul.mubr.bf16.gmra.mxu1 %v4110_v58  ;;  %2267 = vmatprep.mubr.bf16.mxu0 %v3451_v32 }
 0x148   : > { %2114 = vmatprep.mubr.bf16.mxu1 %v4120_v1 }
 0x149   : > { %v4230_v59 = vpop.f32.mrf.mxu1 }
 0x14b   : > { %v4232_v60 = vpop.f32.mrf.mxu1 }
 0x14d   : > { %v4234_v61 = vpop.f32.mrf.mxu1 }
 0x14e   : > { %v1610_v63 = vpop.f32.mrf.mxu0  ;;  %2268 = vmatmul.mubr.bf16.gmra.mxu0 %v3972_v21 }
 0x14f   : > { %v4238_v0 = vpop.f32.mrf.mxu1  ;;  %2115 = vmatmul.mubr.bf16.gmra.mxu1 %v4129_v4  ;;  %v1804_v2 = vadd.f32 %v1803_v3, %v1610_v63  ;;  %2277 = vmatprep.mubr.bf16.mxu0 %v3451_v32 }
 0x150   : > { %2124 = vmatprep.mubr.bf16.mxu1 %v4134_v5  ;;  %v1612_v7 = vpop.f32.mrf.mxu0 }
 0x151   : > { %v4244_v8 = vpop.f32.mrf.mxu1  ;;  %v1806_v9 = vadd.f32 %v1805_v12, %v1612_v7  ;;  %2476 = vst [vmem:[%s4248_s9] sm:$0xff] %v1804_v2 }
 0x152   : > { %v1614_v10 = vpop.f32.mrf.mxu0 }
 0x153   : > { %v4246_v11 = vpop.f32.mrf.mxu1  ;;  %v1808_v14 = vadd.f32 %v1807_v22, %v1614_v10  ;;  %2477 = vst [vmem:[%s4248_s9 + $0x8] sm:$0xff] %v1806_v9 }
 0x154   : > { %v1616_v15 = vpop.f32.mrf.mxu0 }
 0x155   : > { %v4251_v16 = vpop.f32.mrf.mxu1  ;;  %v1810_v17 = vadd.f32 %v1809_v45, %v1616_v15  ;;  %2480 = vst [vmem:[%s4248_s9 + $0x20] sm:$0xff] %v1808_v14 }
 0x156   : > { %v1620_v18 = vpop.f32.mrf.mxu0  ;;  %2278 = vmatmul.mubr.bf16.gmra.mxu0 %v4001_v27 }
 0x157   : > { %v4254_v19 = vpop.f32.mrf.mxu1  ;;  %2125 = vmatmul.mubr.bf16.gmra.mxu1 %v4145_v13  ;;  %v1814_v20 = vadd.f32 %v1813_v48, %v1620_v18  ;;  %2287 = vmatprep.mubr.bf16.mxu0 %v3451_v32  ;;  %2481 = vst [vmem:[%s4248_s9 + $0x28] sm:$0xff] %v1810_v17 }
 0x158   : > { %2134 = vmatprep.mubr.bf16.mxu1 %v4150_v6  ;;  %v1622_v21 = vpop.f32.mrf.mxu0 }
 0x159   : > { %v4261_v23 = vpop.f32.mrf.mxu1  ;;  %v1816_v24 = vadd.f32 %v1815_v31, %v1622_v21  ;;  %2484 = vst [vmem:[%s4248_s9 + $0x40] sm:$0xff] %v1814_v20 }
 0x15a   : > { %v1624_v25 = vpop.f32.mrf.mxu0 }
 0x15b   : > { %v4264_v26 = vpop.f32.mrf.mxu1  ;;  %v1818_v28 = vadd.f32 %v1817_v49, %v1624_v25  ;;  %2485 = vst [vmem:[%s4248_s9 + $0x48] sm:$0xff] %v1816_v24 }
 0x15c   : > { %v1626_v29 = vpop.f32.mrf.mxu0 }
 0x15d   : > { %v4267_v27 = vpop.f32.mrf.mxu1  ;;  %v1820_v33 = vadd.f32 %v1819_v50, %v1626_v29  ;;  %2488 = vst [vmem:[%s4248_s9 + $0x60] sm:$0xff] %v1818_v28 }
 0x15e   : > { %v1630_v34 = vpop.f32.mrf.mxu0  ;;  %2288 = vmatmul.mubr.bf16.gmra.mxu0 %v4020_v30 }
 0x15f   : > { %v4270_v36 = vpop.f32.mrf.mxu1  ;;  %2135 = vmatmul.mubr.bf16.gmra.mxu1 %v4163_v38  ;;  %v1824_v37 = vadd.f32 %v1823_v42, %v1630_v34  ;;  %2297 = vmatprep.mubr.bf16.mxu0 %v3451_v32  ;;  %2489 = vst [vmem:[%s4248_s9 + $0x68] sm:$0xff] %v1820_v33 }
 0x160   : > { %2144 = vmatprep.mubr.bf16.mxu1 %v4168_v43  ;;  %v1632_v40 = vpop.f32.mrf.mxu0 }
 0x161   : > { %v4277_v41 = vpop.f32.mrf.mxu1  ;;  %v1826_v47 = vadd.f32 %v1825_v53, %v1632_v40  ;;  %2492 = vst [vmem:[%s4248_s9 + $0x80] sm:$0xff] %v1824_v37 }
 0x162   : > { %v1634_v51 = vpop.f32.mrf.mxu0 }
 0x163   : > { %v4280_v56 = vpop.f32.mrf.mxu1  ;;  %v1828_v58 = vadd.f32 %v4220_v54, %v1634_v51  ;;  %2493 = vst [vmem:[%s4248_s9 + $0x88] sm:$0xff] %v1826_v47 }
 0x164   : > { %v1636_v30 = vpop.f32.mrf.mxu0 }
 0x165   : > { %v4284_v1 = vpop.f32.mrf.mxu1  ;;  %v1830_v4 = vadd.f32 %v4222_v52, %v1636_v30  ;;  %2496 = vst [vmem:[%s4248_s9 + $0xa0] sm:$0xff] %v1828_v58 }
 0x166   : > { %v1640_v5 = vpop.f32.mrf.mxu0  ;;  %2298 = vmatmul.mubr.bf16.gmra.mxu0 %v4039_v35 }
 0x167   : > { %v4288_v13 = vpop.f32.mrf.mxu1  ;;  %2145 = vmatmul.mubr.bf16.gmra.mxu1 %v4181_v44  ;;  %v1834_v6 = vadd.f32 %v4224_v57, %v1640_v5  ;;  %2307 = vmatprep.mubr.bf16.mxu0 %v3451_v32  ;;  %2497 = vst [vmem:[%s4248_s9 + $0xa8] sm:$0xff] %v1830_v4 }
 0x168   : > { %2327 = vmatprep.mubr.bf16.mxu1 %v3451_v32  ;;  %v1642_v38 = vpop.f32.mrf.mxu0 }
 0x169   : > { %v4296_v43 = vpop.f32.mrf.mxu1  ;;  %v1836_v3 = vadd.f32 %v4230_v59, %v1642_v38  ;;  %2500 = vst [vmem:[%s4248_s9 + $0xc0] sm:$0xff] %v1834_v6 }
 0x16a   : > { %v1644_v12 = vpop.f32.mrf.mxu0 }
 0x16b   : > { %v4300_v22 = vpop.f32.mrf.mxu1  ;;  %v1838_v35 = vadd.f32 %v4232_v60, %v1644_v12  ;;  %2501 = vst [vmem:[%s4248_s9 + $0xc8] sm:$0xff] %v1836_v3 }
 0x16c   : > { %v1646_v44 = vpop.f32.mrf.mxu0 }
 0x16d   : > { %v4304_v45 = vpop.f32.mrf.mxu1  ;;  %v1840_v48 = vadd.f32 %v4234_v61, %v1646_v44  ;;  %2504 = vst [vmem:[%s4248_s9 + $0xe0] sm:$0xff] %v1838_v35 }
 0x16e   : > { %v1650_v31 = vpop.f32.mrf.mxu0  ;;  %2308 = vmatmul.mubr.bf16.gmra.mxu0 %v4058_v39 }
 0x16f   : > { %v4308_v49 = vpop.f32.mrf.mxu1  ;;  %2328 = vmatmul.mubr.bf16.vlgmr.msra.gmra.mxu1 %v4096_v55  ;;  %v1844_v50 = vadd.f32 %v4238_v0, %v1650_v31  ;;  %2317 = vmatprep.mubr.bf16.mxu0 %v3451_v32  ;;  %2505 = vst [vmem:[%s4248_s9 + $0xe8] sm:$0xff] %v1840_v48 }
 0x170   : > { %2337 = vmatprep.mubr.bf16.mxu1 %v3451_v32  ;;  %v1652_v42 = vpop.f32.mrf.mxu0 }
 0x171   : > { %v4316_v53 = vpop.f32.mrf.mxu1  ;;  %v1846_v54 = vadd.f32 %v4244_v8, %v1652_v42  ;;  %2508 = vst [vmem:[%s4248_s9 + $0x100] sm:$0xff] %v1844_v50 }
 0x172   : > { %v1654_v52 = vpop.f32.mrf.mxu0 }
 0x173   : > { %v4320_v39 = vpop.f32.mrf.mxu1  ;;  %v1848_v55 = vadd.f32 %v4246_v11, %v1654_v52  ;;  %2509 = vst [vmem:[%s4248_s9 + $0x108] sm:$0xff] %v1846_v54 }
 0x174   : > { %v1656_v57 = vpop.f32.mrf.mxu0 }
 0x175   : > { %v4324_v59 = vpop.f32.mrf.mxu1  ;;  %v1850_v32 = vadd.f32 %v4251_v16, %v1656_v57  ;;  %2512 = vst [vmem:[%s4248_s9 + $0x120] sm:$0xff] %v1848_v55 }
 0x176   : > { %v1660_v60 = vpop.f32.mrf.mxu0  ;;  %2318 = vmatmul.mubr.bf16.gmra.mxu0 %v4077_v46 }
 0x177   : > { %v4328_v61 = vpop.f32.mrf.mxu1  ;;  %2338 = vmatmul.mubr.bf16.gmra.mxu1 %v4115_v62  ;;  %v1854_v63 = vadd.f32 %v4254_v19, %v1660_v60  ;;  %2513 = vst [vmem:[%s4248_s9 + $0x128] sm:$0xff] %v1850_v32 }
 0x178   : > { %v1662_v0 = vpop.f32.mrf.mxu0 }
 0x179   : > { %v4334_v2 = vpop.f32.mrf.mxu1  ;;  %v1856_v7 = vadd.f32 %v4261_v23, %v1662_v0  ;;  %2516 = vst [vmem:[%s4248_s9 + $0x140] sm:$0xff] %v1854_v63 }
 0x17a   : > { %v1664_v8 = vpop.f32.mrf.mxu0 }
 0x17b   : > { %v4338_v9 = vpop.f32.mrf.mxu1  ;;  %v1858_v46 = vadd.f32 %v4264_v26, %v1664_v8  ;;  %2517 = vst [vmem:[%s4248_s9 + $0x148] sm:$0xff] %v1856_v7 }
 0x17c   : > { %v1666_v10 = vpop.f32.mrf.mxu0 }
 0x17d   : > { %v4342_v62 = vpop.f32.mrf.mxu1  ;;  %v1860_v11 = vadd.f32 %v4267_v27, %v1666_v10  ;;  %2520 = vst [vmem:[%s4248_s9 + $0x160] sm:$0xff] %v1858_v46 }
 0x17e   : > { %v1670_v14 = vpop.f32.mrf.mxu0 }
 0x17f   : > { %v4346_v15 = vpop.f32.mrf.mxu1  ;;  %v1864_v16 = vadd.f32 %v4270_v36, %v1670_v14  ;;  %2521 = vst [vmem:[%s4248_s9 + $0x168] sm:$0xff] %v1860_v11 }
 0x180   : > { %v1672_v17 = vpop.f32.mrf.mxu0 }
 0x181   : > { %v4350_v18 = vpop.f32.mrf.mxu1  ;;  %v1866_v19 = vadd.f32 %v4277_v41, %v1672_v17  ;;  %2524 = vst [vmem:[%s4248_s9 + $0x180] sm:$0xff] %v1864_v16 }
 0x182   : > { %v1674_v20 = vpop.f32.mrf.mxu0 }
 0x183   : > { %v4354_v21 = vpop.f32.mrf.mxu1  ;;  %v1868_v23 = vadd.f32 %v4280_v56, %v1674_v20  ;;  %2525 = vst [vmem:[%s4248_s9 + $0x188] sm:$0xff] %v1866_v19 }
 0x184   : > { %v1676_v24 = vpop.f32.mrf.mxu0 }
 0x185   : > { %v4358_v25 = vpop.f32.mrf.mxu1  ;;  %v1870_v26 = vadd.f32 %v4284_v1, %v1676_v24  ;;  %2528 = vst [vmem:[%s4248_s9 + $0x1a0] sm:$0xff] %v1868_v23 }
 0x186   : > { %v1680_v28 = vpop.f32.mrf.mxu0 }
 0x187   : > { %v4362_v29 = vpop.f32.mrf.mxu1  ;;  %v1874_v27 = vadd.f32 %v4288_v13, %v1680_v28  ;;  %2529 = vst [vmem:[%s4248_s9 + $0x1a8] sm:$0xff] %v1870_v26 }
 0x188   : > { %v1682_v33 = vpop.f32.mrf.mxu0 }
 0x189   : > { %v4366_v34 = vpop.f32.mrf.mxu1  ;;  %v1876_v36 = vadd.f32 %v4296_v43, %v1682_v33  ;;  %2532 = vst [vmem:[%s4248_s9 + $0x1c0] sm:$0xff] %v1874_v27 }
 0x18a   : > { %v1684_v37 = vpop.f32.mrf.mxu0 }
 0x18b   : > { %v4370_v40 = vpop.f32.mrf.mxu1  ;;  %v1878_v41 = vadd.f32 %v4300_v22, %v1684_v37  ;;  %2533 = vst [vmem:[%s4248_s9 + $0x1c8] sm:$0xff] %v1876_v36 }
 0x18c   : > { %v1686_v47 = vpop.f32.mrf.mxu0 }
 0x18d   : > { %v4374_v51 = vpop.f32.mrf.mxu1  ;;  %v1880_v56 = vadd.f32 %v4304_v45, %v1686_v47  ;;  %2536 = vst [vmem:[%s4248_s9 + $0x1e0] sm:$0xff] %v1878_v41 }
 0x18e   : > { %v1690_v58 = vpop.f32.mrf.mxu0 }
 0x18f   : > { %v4378_v30 = vpop.f32.mrf.mxu1  ;;  %v1884_v1 = vadd.f32 %v4308_v49, %v1690_v58  ;;  %2537 = vst [vmem:[%s4248_s9 + $0x1e8] sm:$0xff] %v1880_v56 }
 0x190   : > { %v1692_v4 = vpop.f32.mrf.mxu0 }
 0x191   : > { %v4382_v5 = vpop.f32.mrf.mxu1  ;;  %v1886_v13 = vadd.f32 %v4316_v53, %v1692_v4  ;;  %2540 = vst [vmem:[%s4248_s9 + $0x200] sm:$0xff] %v1884_v1 }
 0x192   : > { %v1694_v6 = vpop.f32.mrf.mxu0 }
 0x193   : > { %v4386_v38 = vpop.f32.mrf.mxu1  ;;  %v1888_v43 = vadd.f32 %v4320_v39, %v1694_v6  ;;  %2541 = vst [vmem:[%s4248_s9 + $0x208] sm:$0xff] %v1886_v13 }
 0x194   : > { %v1696_v3 = vpop.f32.mrf.mxu0 }
 0x195   : > { %v4390_v12 = vpop.f32.mrf.mxu1  ;;  %v1890_v22 = vadd.f32 %v4324_v59, %v1696_v3  ;;  %2544 = vst [vmem:[%s4248_s9 + $0x220] sm:$0xff] %v1888_v43 }
 0x196   : > { %v1700_v35 = vpop.f32.mrf.mxu0 }
 0x197   : > { %v4394_v44 = vpop.f32.mrf.mxu1  ;;  %v1894_v45 = vadd.f32 %v4328_v61, %v1700_v35  ;;  %2545 = vst [vmem:[%s4248_s9 + $0x228] sm:$0xff] %v1890_v22 }
 0x198   : > { %v1702_v48 = vpop.f32.mrf.mxu0 }
 0x199   : > { %v4398_v31 = vpop.f32.mrf.mxu1  ;;  %v1896_v49 = vadd.f32 %v4334_v2, %v1702_v48  ;;  %2548 = vst [vmem:[%s4248_s9 + $0x240] sm:$0xff] %v1894_v45 }
 0x19a   : > { %v1704_v50 = vpop.f32.mrf.mxu0 }
 0x19b   : > { %v4402_v42 = vpop.f32.mrf.mxu1  ;;  %v1898_v53 = vadd.f32 %v4338_v9, %v1704_v50  ;;  %2549 = vst [vmem:[%s4248_s9 + $0x248] sm:$0xff] %v1896_v49 }
 0x19c   : > { %v1706_v54 = vpop.f32.mrf.mxu0 }
 0x19d   : > { %v4406_v52 = vpop.f32.mrf.mxu1  ;;  %v1900_v39 = vadd.f32 %v4342_v62, %v1706_v54  ;;  %2552 = vst [vmem:[%s4248_s9 + $0x260] sm:$0xff] %v1898_v53 }
 0x19e   : > { %v1710_v55 = vpop.f32.mrf.mxu0 }
 0x19f   : > { %v4410_v57 = vpop.f32.mrf.mxu1  ;;  %v1904_v59 = vadd.f32 %v4346_v15, %v1710_v55  ;;  %2553 = vst [vmem:[%s4248_s9 + $0x268] sm:$0xff] %v1900_v39 }
 0x1a0   : > { %v1712_v32 = vpop.f32.mrf.mxu0 }
 0x1a1   : > { %v4414_v60 = vpop.f32.mrf.mxu1  ;;  %v1906_v61 = vadd.f32 %v4350_v18, %v1712_v32  ;;  %2556 = vst [vmem:[%s4248_s9 + $0x280] sm:$0xff] %v1904_v59 }
 0x1a2   : > { %v1714_v63 = vpop.f32.mrf.mxu0 }
 0x1a3   : > { %v4418_v0 = vpop.f32.mrf.mxu1  ;;  %v1908_v2 = vadd.f32 %v4354_v21, %v1714_v63  ;;  %2557 = vst [vmem:[%s4248_s9 + $0x288] sm:$0xff] %v1906_v61 }
 0x1a4   : > { %v1716_v7 = vpop.f32.mrf.mxu0 }
 0x1a5   : > { %v4422_v8 = vpop.f32.mrf.mxu1  ;;  %v1910_v9 = vadd.f32 %v4358_v25, %v1716_v7  ;;  %2560 = vst [vmem:[%s4248_s9 + $0x2a0] sm:$0xff] %v1908_v2 }
 0x1a6   : > { %v1720_v46 = vpop.f32.mrf.mxu0 }
 0x1a7   : > { %v4426_v10 = vpop.f32.mrf.mxu1  ;;  %v1914_v62 = vadd.f32 %v4362_v29, %v1720_v46  ;;  %2561 = vst [vmem:[%s4248_s9 + $0x2a8] sm:$0xff] %v1910_v9 }
 0x1a8   : > { %v1722_v11 = vpop.f32.mrf.mxu0 }
 0x1a9   : > { %v4430_v14 = vpop.f32.mrf.mxu1  ;;  %v1916_v15 = vadd.f32 %v4366_v34, %v1722_v11  ;;  %2564 = vst [vmem:[%s4248_s9 + $0x2c0] sm:$0xff] %v1914_v62 }
 0x1aa   : > { %v1724_v16 = vpop.f32.mrf.mxu0 }
 0x1ab   : > { %v4434_v17 = vpop.f32.mrf.mxu1  ;;  %v1918_v18 = vadd.f32 %v4370_v40, %v1724_v16  ;;  %2565 = vst [vmem:[%s4248_s9 + $0x2c8] sm:$0xff] %v1916_v15 }
 0x1ac   : > { %v1726_v19 = vpop.f32.mrf.mxu0 }
 0x1ad   : > { %v4438_v20 = vpop.f32.mrf.mxu1  ;;  %v1920_v21 = vadd.f32 %v4374_v51, %v1726_v19  ;;  %2568 = vst [vmem:[%s4248_s9 + $0x2e0] sm:$0xff] %v1918_v18 }
 0x1ae   : > { %v1730_v23 = vpop.f32.mrf.mxu0 }
 0x1af   : > { %v4442_v24 = vpop.f32.mrf.mxu1  ;;  %v1924_v25 = vadd.f32 %v4378_v30, %v1730_v23  ;;  %2569 = vst [vmem:[%s4248_s9 + $0x2e8] sm:$0xff] %v1920_v21 }
 0x1b0   : > { %v1732_v26 = vpop.f32.mrf.mxu0 }
 0x1b1   : > { %v4446_v28 = vpop.f32.mrf.mxu1  ;;  %v1926_v29 = vadd.f32 %v4382_v5, %v1732_v26  ;;  %2572 = vst [vmem:[%s4248_s9 + $0x300] sm:$0xff] %v1924_v25 }
 0x1b2   : > { %v1734_v27 = vpop.f32.mrf.mxu0 }
 0x1b3   : > { %v4450_v33 = vpop.f32.mrf.mxu1  ;;  %v1928_v34 = vadd.f32 %v4386_v38, %v1734_v27  ;;  %2573 = vst [vmem:[%s4248_s9 + $0x308] sm:$0xff] %v1926_v29 }
 0x1b4   : > { %v1736_v36 = vpop.f32.mrf.mxu0 }
 0x1b5   : > { %v4454_v37 = vpop.f32.mrf.mxu1  ;;  %v1930_v40 = vadd.f32 %v4390_v12, %v1736_v36  ;;  %2576 = vst [vmem:[%s4248_s9 + $0x320] sm:$0xff] %v1928_v34 }
 0x1b6   : > { %v1740_v41 = vpop.f32.mrf.mxu0 }
 0x1b7   : > { %v4458_v47 = vpop.f32.mrf.mxu1  ;;  %v1934_v51 = vadd.f32 %v4394_v44, %v1740_v41  ;;  %2577 = vst [vmem:[%s4248_s9 + $0x328] sm:$0xff] %v1930_v40 }
 0x1b8   : > { %v1742_v56 = vpop.f32.mrf.mxu0 }
 0x1b9   : > { %v4462_v58 = vpop.f32.mrf.mxu1  ;;  %v1936_v30 = vadd.f32 %v4398_v31, %v1742_v56  ;;  %2580 = vst [vmem:[%s4248_s9 + $0x340] sm:$0xff] %v1934_v51 }
 0x1ba   : > { %v1744_v1 = vpop.f32.mrf.mxu0 }
 0x1bb   : > { %v4466_v4 = vpop.f32.mrf.mxu1  ;;  %v1938_v5 = vadd.f32 %v4402_v42, %v1744_v1  ;;  %2581 = vst [vmem:[%s4248_s9 + $0x348] sm:$0xff] %v1936_v30 }
 0x1bc   : > { %v1746_v13 = vpop.f32.mrf.mxu0 }
 0x1bd   : > { %v4470_v6 = vpop.f32.mrf.mxu1  ;;  %v1940_v38 = vadd.f32 %v4406_v52, %v1746_v13  ;;  %2584 = vst [vmem:[%s4248_s9 + $0x360] sm:$0xff] %v1938_v5 }
 0x1be   : > { %v1750_v43 = vpop.f32.mrf.mxu0 }
 0x1bf   : > { %v4474_v3 = vpop.f32.mrf.mxu1  ;;  %v1944_v12 = vadd.f32 %v4410_v57, %v1750_v43  ;;  %2585 = vst [vmem:[%s4248_s9 + $0x368] sm:$0xff] %v1940_v38 }
 0x1c0   : > { %v1752_v22 = vpop.f32.mrf.mxu0 }
 0x1c1   : > { %v4478_v35 = vpop.f32.mrf.mxu1  ;;  %v1946_v44 = vadd.f32 %v4414_v60, %v1752_v22  ;;  %2588 = vst [vmem:[%s4248_s9 + $0x380] sm:$0xff] %v1944_v12 }
 0x1c2   : > { %v1754_v45 = vpop.f32.mrf.mxu0 }
 0x1c3   : > { %v4482_v48 = vpop.f32.mrf.mxu1  ;;  %v1948_v31 = vadd.f32 %v4418_v0, %v1754_v45  ;;  %2589 = vst [vmem:[%s4248_s9 + $0x388] sm:$0xff] %v1946_v44 }
 0x1c4   : > { %v1756_v49 = vpop.f32.mrf.mxu0 }
 0x1c5   : > { %v4486_v50 = vpop.f32.mrf.mxu1  ;;  %v1950_v42 = vadd.f32 %v4422_v8, %v1756_v49  ;;  %2592 = vst [vmem:[%s4248_s9 + $0x3a0] sm:$0xff] %v1948_v31 }
 0x1c6   : > { %v1760_v53 = vpop.f32.mrf.mxu0 }
 0x1c7   : > { %v4490_v54 = vpop.f32.mrf.mxu1  ;;  %v1954_v52 = vadd.f32 %v4426_v10, %v1760_v53  ;;  %2593 = vst [vmem:[%s4248_s9 + $0x3a8] sm:$0xff] %v1950_v42 }
 0x1c8   : > { %v1762_v39 = vpop.f32.mrf.mxu0 }
 0x1c9   : > { %v4494_v55 = vpop.f32.mrf.mxu1  ;;  %v1956_v57 = vadd.f32 %v4430_v14, %v1762_v39  ;;  %2596 = vst [vmem:[%s4248_s9 + $0x3c0] sm:$0xff] %v1954_v52 }
 0x1ca   : > { %v1764_v59 = vpop.f32.mrf.mxu0 }
 0x1cb   : > { %v4498_v32 = vpop.f32.mrf.mxu1  ;;  %v1958_v60 = vadd.f32 %v4434_v17, %v1764_v59  ;;  %2597 = vst [vmem:[%s4248_s9 + $0x3c8] sm:$0xff] %v1956_v57 }
 0x1cc   : > { %v1766_v61 = vpop.f32.mrf.mxu0 }
 0x1cd   : > { %v4502_v63 = vpop.f32.mrf.mxu1  ;;  %v1960_v0 = vadd.f32 %v4438_v20, %v1766_v61  ;;  %2600 = vst [vmem:[%s4248_s9 + $0x3e0] sm:$0xff] %v1958_v60 }
 0x1ce   : > { %v2189_v7 = vpop.f32.mrf.mxu0 }
 0x1cf   : > { %v4506_v2 = vpop.f32.mrf.mxu1  ;;  %v2190_v8 = vadd.f32 %v2189_v7, %v4442_v24  ;;  %2601 = vst [vmem:[%s4248_s9 + $0x3e8] sm:$0xff] %v1960_v0 }
 0x1d0   : > { %v2191_v46 = vpop.f32.mrf.mxu0 }
 0x1d1   : > { %v4510_v9 = vpop.f32.mrf.mxu1  ;;  %v2192_v10 = vadd.f32 %v2191_v46, %v4446_v28  ;;  %2478 = vst [vmem:[%s4248_s9 + $0x10] sm:$0xff] %v2190_v8 }
 0x1d2   : > { %v2193_v11 = vpop.f32.mrf.mxu0 }
 0x1d3   : > { %v4514_v62 = vpop.f32.mrf.mxu1  ;;  %v2194_v14 = vadd.f32 %v2193_v11, %v4450_v33  ;;  %2479 = vst [vmem:[%s4248_s9 + $0x18] sm:$0xff] %v2192_v10 }
 0x1d4   : > { %v2195_v16 = vpop.f32.mrf.mxu0 }
 0x1d5   : > { %v4518_v15 = vpop.f32.mrf.mxu1  ;;  %v2196_v17 = vadd.f32 %v2195_v16, %v4454_v37  ;;  %2482 = vst [vmem:[%s4248_s9 + $0x30] sm:$0xff] %v2194_v14 }
 0x1d6   : > { %v2199_v19 = vpop.f32.mrf.mxu0 }
 0x1d7   : > { %v4522_v18 = vpop.f32.mrf.mxu1  ;;  %v2200_v20 = vadd.f32 %v2199_v19, %v4458_v47  ;;  %2483 = vst [vmem:[%s4248_s9 + $0x38] sm:$0xff] %v2196_v17 }
 0x1d8   : > { %v2201_v23 = vpop.f32.mrf.mxu0 }
 0x1d9   : > { %v4526_v21 = vpop.f32.mrf.mxu1  ;;  %v2202_v24 = vadd.f32 %v2201_v23, %v4462_v58  ;;  %2486 = vst [vmem:[%s4248_s9 + $0x50] sm:$0xff] %v2200_v20 }
 0x1da   : > { %v2203_v26 = vpop.f32.mrf.mxu0 }
 0x1db   : > { %v4530_v25 = vpop.f32.mrf.mxu1  ;;  %v2204_v28 = vadd.f32 %v2203_v26, %v4466_v4  ;;  %2487 = vst [vmem:[%s4248_s9 + $0x58] sm:$0xff] %v2202_v24 }
 0x1dc   : > { %v2205_v27 = vpop.f32.mrf.mxu0 }
 0x1dd   : > { %v4534_v29 = vpop.f32.mrf.mxu1  ;;  %v2206_v33 = vadd.f32 %v2205_v27, %v4470_v6  ;;  %2490 = vst [vmem:[%s4248_s9 + $0x70] sm:$0xff] %v2204_v28 }
 0x1de   : > { %v2209_v36 = vpop.f32.mrf.mxu0 }
 0x1df   : > { %v4538_v34 = vpop.f32.mrf.mxu1  ;;  %v2210_v37 = vadd.f32 %v2209_v36, %v4474_v3  ;;  %2491 = vst [vmem:[%s4248_s9 + $0x78] sm:$0xff] %v2206_v33 }
 0x1e0   : > { %v2211_v41 = vpop.f32.mrf.mxu0 }
 0x1e1   : > { %v4542_v40 = vpop.f32.mrf.mxu1  ;;  %v2212_v47 = vadd.f32 %v2211_v41, %v4478_v35  ;;  %2494 = vst [vmem:[%s4248_s9 + $0x90] sm:$0xff] %v2210_v37 }
 0x1e2   : > { %v2213_v56 = vpop.f32.mrf.mxu0 }
 0x1e3   : > { %v4546_v51 = vpop.f32.mrf.mxu1  ;;  %v2214_v58 = vadd.f32 %v2213_v56, %v4482_v48  ;;  %2495 = vst [vmem:[%s4248_s9 + $0x98] sm:$0xff] %v2212_v47 }
 0x1e4   : > { %v2215_v1 = vpop.f32.mrf.mxu0 }
 0x1e5   : > { %v4550_v30 = vpop.f32.mrf.mxu1  ;;  %v2216_v4 = vadd.f32 %v2215_v1, %v4486_v50  ;;  %2498 = vst [vmem:[%s4248_s9 + $0xb0] sm:$0xff] %v2214_v58 }
 0x1e6   : > { %v2219_v13 = vpop.f32.mrf.mxu0 }
 0x1e7   : > { %v4554_v5 = vpop.f32.mrf.mxu1  ;;  %v2220_v6 = vadd.f32 %v2219_v13, %v4490_v54  ;;  %2499 = vst [vmem:[%s4248_s9 + $0xb8] sm:$0xff] %v2216_v4 }
 0x1e8   : > { %v2221_v43 = vpop.f32.mrf.mxu0 }
 0x1e9   : > { %v4558_v38 = vpop.f32.mrf.mxu1  ;;  %v2222_v3 = vadd.f32 %v2221_v43, %v4494_v55  ;;  %2502 = vst [vmem:[%s4248_s9 + $0xd0] sm:$0xff] %v2220_v6 }
 0x1ea   : > { %v2223_v22 = vpop.f32.mrf.mxu0 }
 0x1eb   : > { %v4562_v12 = vpop.f32.mrf.mxu1  ;;  %v2224_v35 = vadd.f32 %v2223_v22, %v4498_v32  ;;  %2503 = vst [vmem:[%s4248_s9 + $0xd8] sm:$0xff] %v2222_v3 }
 0x1ec   : > { %v2225_v45 = vpop.f32.mrf.mxu0 }
 0x1ed   : > { %v4566_v44 = vpop.f32.mrf.mxu1  ;;  %v2226_v48 = vadd.f32 %v2225_v45, %v4502_v63  ;;  %2506 = vst [vmem:[%s4248_s9 + $0xf0] sm:$0xff] %v2224_v35 }
 0x1ee   : > { %v2229_v49 = vpop.f32.mrf.mxu0 }
 0x1ef   : > { %v4570_v31 = vpop.f32.mrf.mxu1  ;;  %v2230_v50 = vadd.f32 %v2229_v49, %v4506_v2  ;;  %2507 = vst [vmem:[%s4248_s9 + $0xf8] sm:$0xff] %v2226_v48 }
 0x1f0   : > { %v2231_v53 = vpop.f32.mrf.mxu0 }
 0x1f1   : > { %v4574_v42 = vpop.f32.mrf.mxu1  ;;  %v2232_v54 = vadd.f32 %v2231_v53, %v4510_v9  ;;  %2510 = vst [vmem:[%s4248_s9 + $0x110] sm:$0xff] %v2230_v50 }
 0x1f2   : > { %v2233_v39 = vpop.f32.mrf.mxu0 }
 0x1f3   : > { %v4578_v52 = vpop.f32.mrf.mxu1  ;;  %v2234_v55 = vadd.f32 %v2233_v39, %v4514_v62  ;;  %2511 = vst [vmem:[%s4248_s9 + $0x118] sm:$0xff] %v2232_v54 }
 0x1f4   : > { %v2235_v59 = vpop.f32.mrf.mxu0 }
 0x1f5   : > { %v4582_v57 = vpop.f32.mrf.mxu1  ;;  %v2236_v32 = vadd.f32 %v2235_v59, %v4518_v15  ;;  %2514 = vst [vmem:[%s4248_s9 + $0x130] sm:$0xff] %v2234_v55 }
 0x1f6   : > { %v2239_v61 = vpop.f32.mrf.mxu0 }
 0x1f7   : > { %v4586_v60 = vpop.f32.mrf.mxu1  ;;  %v2240_v63 = vadd.f32 %v2239_v61, %v4522_v18  ;;  %2515 = vst [vmem:[%s4248_s9 + $0x138] sm:$0xff] %v2236_v32 }
 0x1f8   : > { %v2241_v2 = vpop.f32.mrf.mxu0 }
 0x1f9   : > { %v4590_v0 = vpop.f32.mrf.mxu1  ;;  %v2242_v7 = vadd.f32 %v2241_v2, %v4526_v21  ;;  %2518 = vst [vmem:[%s4248_s9 + $0x150] sm:$0xff] %v2240_v63 }
 0x1fa   : > { %v2243_v9 = vpop.f32.mrf.mxu0 }
 0x1fb   : > { %v4594_v8 = vpop.f32.mrf.mxu1  ;;  %v2244_v46 = vadd.f32 %v2243_v9, %v4530_v25  ;;  %2519 = vst [vmem:[%s4248_s9 + $0x158] sm:$0xff] %v2242_v7 }
 0x1fc   : > { %v2245_v62 = vpop.f32.mrf.mxu0 }
 0x1fd   : > { %v4598_v10 = vpop.f32.mrf.mxu1  ;;  %v2246_v11 = vadd.f32 %v2245_v62, %v4534_v29  ;;  %2522 = vst [vmem:[%s4248_s9 + $0x170] sm:$0xff] %v2244_v46 }
 0x1fe   : > { %v2249_v15 = vpop.f32.mrf.mxu0 }
 0x1ff   : > { %v4602_v14 = vpop.f32.mrf.mxu1  ;;  %v2250_v16 = vadd.f32 %v2249_v15, %v4538_v34  ;;  %2523 = vst [vmem:[%s4248_s9 + $0x178] sm:$0xff] %v2246_v11 }
 0x200   : > { %v2251_v18 = vpop.f32.mrf.mxu0 }
 0x201   : > { %v4606_v17 = vpop.f32.mrf.mxu1  ;;  %v2252_v19 = vadd.f32 %v2251_v18, %v4542_v40  ;;  %2526 = vst [vmem:[%s4248_s9 + $0x190] sm:$0xff] %v2250_v16 }
 0x202   : > { %v2253_v21 = vpop.f32.mrf.mxu0 }
 0x203   : > { %v4610_v20 = vpop.f32.mrf.mxu1  ;;  %v2254_v23 = vadd.f32 %v2253_v21, %v4546_v51  ;;  %2527 = vst [vmem:[%s4248_s9 + $0x198] sm:$0xff] %v2252_v19 }
 0x204   : > { %v2255_v25 = vpop.f32.mrf.mxu0 }
 0x205   : > { %v4614_v24 = vpop.f32.mrf.mxu1  ;;  %v2256_v26 = vadd.f32 %v2255_v25, %v4550_v30  ;;  %2530 = vst [vmem:[%s4248_s9 + $0x1b0] sm:$0xff] %v2254_v23 }
 0x206   : > { %v2259_v29 = vpop.f32.mrf.mxu0 }
 0x207   : > { %v4618_v28 = vpop.f32.mrf.mxu1  ;;  %v2260_v27 = vadd.f32 %v2259_v29, %v4554_v5  ;;  %2531 = vst [vmem:[%s4248_s9 + $0x1b8] sm:$0xff] %v2256_v26 }
 0x208   : > { %v2261_v34 = vpop.f32.mrf.mxu0 }
 0x209   : > { %v4622_v33 = vpop.f32.mrf.mxu1  ;;  %v2262_v36 = vadd.f32 %v2261_v34, %v4558_v38  ;;  %2534 = vst [vmem:[%s4248_s9 + $0x1d0] sm:$0xff] %v2260_v27 }
 0x20a   : > { %v2263_v40 = vpop.f32.mrf.mxu0 }
 0x20b   : > { %v4626_v37 = vpop.f32.mrf.mxu1  ;;  %v2264_v41 = vadd.f32 %v2263_v40, %v4562_v12  ;;  %2535 = vst [vmem:[%s4248_s9 + $0x1d8] sm:$0xff] %v2262_v36 }
 0x20c   : > { %v2265_v51 = vpop.f32.mrf.mxu0 }
 0x20d   : > { %v4630_v47 = vpop.f32.mrf.mxu1  ;;  %v2266_v56 = vadd.f32 %v2265_v51, %v4566_v44  ;;  %2538 = vst [vmem:[%s4248_s9 + $0x1f0] sm:$0xff] %v2264_v41 }
 0x20e   : > { %v2269_v30 = vpop.f32.mrf.mxu0 }
 0x20f   : > { %v4634_v58 = vpop.f32.mrf.mxu1  ;;  %v2270_v1 = vadd.f32 %v2269_v30, %v4570_v31  ;;  %2539 = vst [vmem:[%s4248_s9 + $0x1f8] sm:$0xff] %v2266_v56 }
 0x210   : > { %v2271_v5 = vpop.f32.mrf.mxu0 }
 0x211   : > { %v4638_v4 = vpop.f32.mrf.mxu1  ;;  %v2272_v13 = vadd.f32 %v2271_v5, %v4574_v42  ;;  %2542 = vst [vmem:[%s4248_s9 + $0x210] sm:$0xff] %v2270_v1 }
 0x212   : > { %v2273_v38 = vpop.f32.mrf.mxu0 }
 0x213   : > { %v4642_v6 = vpop.f32.mrf.mxu1  ;;  %v2274_v43 = vadd.f32 %v2273_v38, %v4578_v52  ;;  %2543 = vst [vmem:[%s4248_s9 + $0x218] sm:$0xff] %v2272_v13 }
 0x214   : > { %v2275_v12 = vpop.f32.mrf.mxu0 }
 0x215   : > { %v4646_v3 = vpop.f32.mrf.mxu1  ;;  %v2276_v22 = vadd.f32 %v2275_v12, %v4582_v57  ;;  %2546 = vst [vmem:[%s4248_s9 + $0x230] sm:$0xff] %v2274_v43 }
 0x216   : > { %v2279_v44 = vpop.f32.mrf.mxu0 }
 0x217   : > { %v4650_v35 = vpop.f32.mrf.mxu1  ;;  %v2280_v45 = vadd.f32 %v2279_v44, %v4586_v60  ;;  %2547 = vst [vmem:[%s4248_s9 + $0x238] sm:$0xff] %v2276_v22 }
 0x218   : > { %v2281_v31 = vpop.f32.mrf.mxu0 }
 0x219   : > { %v4654_v48 = vpop.f32.mrf.mxu1  ;;  %v2282_v49 = vadd.f32 %v2281_v31, %v4590_v0  ;;  %2550 = vst [vmem:[%s4248_s9 + $0x250] sm:$0xff] %v2280_v45 }
 0x21a   : > { %v2283_v42 = vpop.f32.mrf.mxu0 }
 0x21b   : > { %v4658_v50 = vpop.f32.mrf.mxu1  ;;  %v2284_v53 = vadd.f32 %v2283_v42, %v4594_v8  ;;  %2551 = vst [vmem:[%s4248_s9 + $0x258] sm:$0xff] %v2282_v49  ;;  %v2631_v49 = vld [vmem:[%s4248_s9 + $0x8] sm:$0xff] (%p3502_p6)  ;;  %v2635_v42 = vld [vmem:[%s4248_s9 + $0x18] sm:$0xff] (%p3502_p6) }
 0x21c   : > { %v2285_v52 = vpop.f32.mrf.mxu0  ;;  %2632 = vst [vmem:[%s4717_s29 + $0x8] sm:$0xff] (%p3502_p6), %v2631_v49  ;;  %2636 = vst [vmem:[%s4717_s29 + $0x18] sm:$0xff] (%p3502_p6), %v2635_v42  ;;  %v2759_v49 = vld [vmem:[%s4248_s9 + $0x208] sm:$0xff] (%p3502_p6)  ;;  %v2763_v42 = vld [vmem:[%s4248_s9 + $0x218] sm:$0xff] (%p3502_p6) }
 0x21d   : > { %v4662_v54 = vpop.f32.mrf.mxu1  ;;  %v2286_v39 = vadd.f32 %v2285_v52, %v4598_v10  ;;  %2554 = vst [vmem:[%s4248_s9 + $0x270] sm:$0xff] %v2284_v53  ;;  %v2637_v53 = vld [vmem:[%s4248_s9 + $0x20] sm:$0xff] (%p3502_p6)  ;;  %v2641_v52 = vld [vmem:[%s4248_s9 + $0x30] sm:$0xff] (%p3502_p6)  ;;  %2760 = vst [vmem:[%s4717_s29 + $0x408] sm:$0xff] (%p3502_p6), %v2759_v49 }
 0x21e   : > { %v2289_v57 = vpop.f32.mrf.mxu0  ;;  %2638 = vst [vmem:[%s4717_s29 + $0x40] sm:$0xff] (%p3502_p6), %v2637_v53  ;;  %2642 = vst [vmem:[%s4717_s29 + $0x50] sm:$0xff] (%p3502_p6), %v2641_v52  ;;  %v2765_v53 = vld [vmem:[%s4248_s9 + $0x220] sm:$0xff] (%p3502_p6)  ;;  %v2769_v52 = vld [vmem:[%s4248_s9 + $0x230] sm:$0xff] (%p3502_p6) }
 0x21f   : > { %v2136_v55 = vpop.f32.mrf.mxu1  ;;  %v2290_v59 = vadd.f32 %v2289_v57, %v4602_v14  ;;  %2555 = vst [vmem:[%s4248_s9 + $0x278] sm:$0xff] %v2286_v39  ;;  %v2643_v39 = vld [vmem:[%s4248_s9 + $0x38] sm:$0xff] (%p3502_p6)  ;;  %v2647_v57 = vld [vmem:[%s4248_s9 + $0x48] sm:$0xff] (%p3502_p6)  ;;  %2764 = vst [vmem:[%s4717_s29 + $0x418] sm:$0xff] (%p3502_p6), %v2763_v42 }
 0x220   : > { %v2291_v60 = vpop.f32.mrf.mxu0  ;;  %2644 = vst [vmem:[%s4717_s29 + $0x58] sm:$0xff] (%p3502_p6), %v2643_v39  ;;  %2648 = vst [vmem:[%s4717_s29 + $0x88] sm:$0xff] (%p3502_p6), %v2647_v57  ;;  %v2771_v39 = vld [vmem:[%s4248_s9 + $0x238] sm:$0xff] (%p3502_p6)  ;;  %v2775_v57 = vld [vmem:[%s4248_s9 + $0x248] sm:$0xff] (%p3502_p6) }
 0x221   : > { %v2138_v32 = vpop.f32.mrf.mxu1  ;;  %v2292_v61 = vadd.f32 %v2291_v60, %v4606_v17  ;;  %2558 = vst [vmem:[%s4248_s9 + $0x290] sm:$0xff] %v2290_v59  ;;  %v2649_v59 = vld [vmem:[%s4248_s9 + $0x50] sm:$0xff] (%p3502_p6)  ;;  %v2653_v60 = vld [vmem:[%s4248_s9 + $0x60] sm:$0xff] (%p3502_p6)  ;;  %2766 = vst [vmem:[%s4717_s29 + $0x440] sm:$0xff] (%p3502_p6), %v2765_v53 }
 0x222   : > { %v2293_v0 = vpop.f32.mrf.mxu0  ;;  %2650 = vst [vmem:[%s4717_s29 + $0x90] sm:$0xff] (%p3502_p6), %v2649_v59  ;;  %2654 = vst [vmem:[%s4717_s29 + $0xc0] sm:$0xff] (%p3502_p6), %v2653_v60  ;;  %v2777_v59 = vld [vmem:[%s4248_s9 + $0x250] sm:$0xff] (%p3502_p6)  ;;  %v2781_v60 = vld [vmem:[%s4248_s9 + $0x260] sm:$0xff] (%p3502_p6) }
 0x223   : > { %v2140_v63 = vpop.f32.mrf.mxu1  ;;  %v2294_v2 = vadd.f32 %v2293_v0, %v4610_v20  ;;  %2559 = vst [vmem:[%s4248_s9 + $0x298] sm:$0xff] %v2292_v61  ;;  %v2655_v61 = vld [vmem:[%s4248_s9 + $0x68] sm:$0xff] (%p3502_p6)  ;;  %v2659_v0 = vld [vmem:[%s4248_s9 + $0x78] sm:$0xff] (%p3502_p6)  ;;  %2770 = vst [vmem:[%s4717_s29 + $0x450] sm:$0xff] (%p3502_p6), %v2769_v52 }
 0x224   : > { %v2295_v8 = vpop.f32.mrf.mxu0  ;;  %2656 = vst [vmem:[%s4717_s29 + $0xc8] sm:$0xff] (%p3502_p6), %v2655_v61  ;;  %2660 = vst [vmem:[%s4717_s29 + $0xd8] sm:$0xff] (%p3502_p6), %v2659_v0  ;;  %v2783_v61 = vld [vmem:[%s4248_s9 + $0x268] sm:$0xff] (%p3502_p6) }
 0x225   : > { %v2142_v7 = vpop.f32.mrf.mxu1  ;;  %v2296_v9 = vadd.f32 %v2295_v8, %v4614_v24  ;;  %2562 = vst [vmem:[%s4248_s9 + $0x2b0] sm:$0xff] %v2294_v2  ;;  %v2661_v2 = vld [vmem:[%s4248_s9 + $0x80] sm:$0xff] (%p3502_p6)  ;;  %v2665_v8 = vld [vmem:[%s4248_s9 + $0x90] sm:$0xff] (%p3502_p6)  ;;  %2772 = vst [vmem:[%s4717_s29 + $0x458] sm:$0xff] (%p3502_p6), %v2771_v39 }
 0x226   : > { %v2299_v10 = vpop.f32.mrf.mxu0  ;;  %2662 = vst [vmem:[%s4717_s29 + $0x100] sm:$0xff] (%p3502_p6), %v2661_v2  ;;  %2666 = vst [vmem:[%s4717_s29 + $0x110] sm:$0xff] (%p3502_p6), %v2665_v8  ;;  %v2787_v0 = vld [vmem:[%s4248_s9 + $0x278] sm:$0xff] (%p3502_p6)  ;;  %v2789_v2 = vld [vmem:[%s4248_s9 + $0x280] sm:$0xff] (%p3502_p6) }
 0x227   : > { %v2146_v46 = vpop.f32.mrf.mxu1  ;;  %v2300_v62 = vadd.f32 %v2299_v10, %v4618_v28  ;;  %2563 = vst [vmem:[%s4248_s9 + $0x2b8] sm:$0xff] %v2296_v9  ;;  %v2667_v9 = vld [vmem:[%s4248_s9 + $0x98] sm:$0xff] (%p3502_p6)  ;;  %v2671_v10 = vld [vmem:[%s4248_s9 + $0xa8] sm:$0xff] (%p3502_p6)  ;;  %2776 = vst [vmem:[%s4717_s29 + $0x488] sm:$0xff] (%p3502_p6), %v2775_v57 }
 0x228   : > { %v2301_v14 = vpop.f32.mrf.mxu0  ;;  %2668 = vst [vmem:[%s4717_s29 + $0x118] sm:$0xff] (%p3502_p6), %v2667_v9  ;;  %2672 = vst [vmem:[%s4717_s29 + $0x148] sm:$0xff] (%p3502_p6), %v2671_v10  ;;  %v2793_v8 = vld [vmem:[%s4248_s9 + $0x290] sm:$0xff] (%p3502_p6)  ;;  %v2799_v10 = vld [vmem:[%s4248_s9 + $0x2a8] sm:$0xff] (%p3502_p6) }
 0x229   : > { %v2148_v11 = vpop.f32.mrf.mxu1  ;;  %v2302_v15 = vadd.f32 %v2301_v14, %v4622_v33  ;;  %2566 = vst [vmem:[%s4248_s9 + $0x2d0] sm:$0xff] %v2300_v62  ;;  %v2673_v62 = vld [vmem:[%s4248_s9 + $0xb0] sm:$0xff] (%p3502_p6)  ;;  %v2677_v14 = vld [vmem:[%s4248_s9 + $0xc0] sm:$0xff] (%p3502_p6)  ;;  %2778 = vst [vmem:[%s4717_s29 + $0x490] sm:$0xff] (%p3502_p6), %v2777_v59 }
 0x22a   : > { %v2303_v17 = vpop.f32.mrf.mxu0  ;;  %2674 = vst [vmem:[%s4717_s29 + $0x150] sm:$0xff] (%p3502_p6), %v2673_v62  ;;  %2678 = vst [vmem:[%s4717_s29 + $0x180] sm:$0xff] (%p3502_p6), %v2677_v14  ;;  %v2795_v9 = vld [vmem:[%s4248_s9 + $0x298] sm:$0xff] (%p3502_p6)  ;;  %v2805_v14 = vld [vmem:[%s4248_s9 + $0x2c0] sm:$0xff] (%p3502_p6) }
 0x22b   : > { %v2150_v16 = vpop.f32.mrf.mxu1  ;;  %v2304_v18 = vadd.f32 %v2303_v17, %v4626_v37  ;;  %2567 = vst [vmem:[%s4248_s9 + $0x2d8] sm:$0xff] %v2302_v15  ;;  %v2679_v15 = vld [vmem:[%s4248_s9 + $0xc8] sm:$0xff] (%p3502_p6)  ;;  %v2683_v17 = vld [vmem:[%s4248_s9 + $0xd8] sm:$0xff] (%p3502_p6)  ;;  %2782 = vst [vmem:[%s4717_s29 + $0x4c0] sm:$0xff] (%p3502_p6), %v2781_v60 }
 0x22c   : > { %v2305_v20 = vpop.f32.mrf.mxu0  ;;  %2680 = vst [vmem:[%s4717_s29 + $0x188] sm:$0xff] (%p3502_p6), %v2679_v15  ;;  %2684 = vst [vmem:[%s4717_s29 + $0x198] sm:$0xff] (%p3502_p6), %v2683_v17  ;;  %v2801_v62 = vld [vmem:[%s4248_s9 + $0x2b0] sm:$0xff] (%p3502_p6)  ;;  %v2807_v15 = vld [vmem:[%s4248_s9 + $0x2c8] sm:$0xff] (%p3502_p6) }
 0x22d   : > { %v2152_v19 = vpop.f32.mrf.mxu1  ;;  %v2306_v21 = vadd.f32 %v2305_v20, %v4630_v47  ;;  %2570 = vst [vmem:[%s4248_s9 + $0x2f0] sm:$0xff] %v2304_v18  ;;  %v2685_v18 = vld [vmem:[%s4248_s9 + $0xe0] sm:$0xff] (%p3502_p6)  ;;  %v2689_v20 = vld [vmem:[%s4248_s9 + $0xf0] sm:$0xff] (%p3502_p6)  ;;  %2784 = vst [vmem:[%s4717_s29 + $0x4c8] sm:$0xff] (%p3502_p6), %v2783_v61 }
 0x22e   : > { %v2309_v23 = vpop.f32.mrf.mxu0  ;;  %2686 = vst [vmem:[%s4717_s29 + $0x1c0] sm:$0xff] (%p3502_p6), %v2685_v18  ;;  %2690 = vst [vmem:[%s4717_s29 + $0x1d0] sm:$0xff] (%p3502_p6), %v2689_v20  ;;  %v2813_v18 = vld [vmem:[%s4248_s9 + $0x2e0] sm:$0xff] (%p3502_p6) }
 0x22f   : > { %v2329_v24 = vpop.f32.mrf.mxu1  ;;  %v2310_v25 = vadd.f32 %v2309_v23, %v4634_v58  ;;  %2571 = vst [vmem:[%s4248_s9 + $0x2f8] sm:$0xff] %v2306_v21  ;;  %v2691_v21 = vld [vmem:[%s4248_s9 + $0xf8] sm:$0xff] (%p3502_p6)  ;;  %v2693_v23 = vld [vmem:[%s4248_s9 + $0x100] sm:$0xff] (%p3502_p6)  ;;  %2788 = vst [vmem:[%s4717_s29 + $0x4d8] sm:$0xff] (%p3502_p6), %v2787_v0 }
 0x230   : > { %v2330_v26 = vadd.f32 %v2329_v24, %v2136_v55  ;;  %v2311_v28 = vpop.f32.mrf.mxu0  ;;  %v2645_v55 = vld [vmem:[%s4248_s9 + $0x40] sm:$0xff] (%p3502_p6)  ;;  %2692 = vst [vmem:[%s4717_s29 + $0x1d8] sm:$0xff] (%p3502_p6), %v2691_v21  ;;  %2694 = vst [vmem:[%s4717_s29 + $0x200] sm:$0xff] (%p3502_p6), %v2693_v23  ;;  %v2695_v24 = vld [vmem:[%s4248_s9 + $0x108] sm:$0xff] (%p3502_p6) }
 0x231   : > { %v2331_v29 = vpop.f32.mrf.mxu1  ;;  %v2312_v27 = vadd.f32 %v2311_v28, %v4638_v4  ;;  %2574 = vst [vmem:[%s4248_s9 + $0x310] sm:$0xff] %v2310_v25  ;;  %2646 = vst [vmem:[%s4717_s29 + $0x80] sm:$0xff] (%p3502_p6), %v2645_v55  ;;  %v2697_v25 = vld [vmem:[%s4248_s9 + $0x110] sm:$0xff] (%p3502_p6)  ;;  %v2701_v28 = vld [vmem:[%s4248_s9 + $0x120] sm:$0xff] (%p3502_p6) }
 0x232   : > { %v2332_v33 = vadd.f32 %v2331_v29, %v2138_v32  ;;  %v2313_v34 = vpop.f32.mrf.mxu0  ;;  %2590 = vst [vmem:[%s4248_s9 + $0x390] sm:$0xff] %v2330_v26  ;;  %v2651_v32 = vld [vmem:[%s4248_s9 + $0x58] sm:$0xff] (%p3502_p6)  ;;  %2696 = vst [vmem:[%s4717_s29 + $0x208] sm:$0xff] (%p3502_p6), %v2695_v24  ;;  %v2703_v29 = vld [vmem:[%s4248_s9 + $0x128] sm:$0xff] (%p3502_p6) }
 0x233   : > { %v2333_v36 = vpop.f32.mrf.mxu1  ;;  %v2314_v37 = vadd.f32 %v2313_v34, %v4642_v6  ;;  %2575 = vst [vmem:[%s4248_s9 + $0x318] sm:$0xff] %v2312_v27  ;;  %2652 = vst [vmem:[%s4717_s29 + $0x98] sm:$0xff] (%p3502_p6), %v2651_v32  ;;  %v2699_v26 = vld [vmem:[%s4248_s9 + $0x118] sm:$0xff] (%p3502_p6)  ;;  %v2705_v27 = vld [vmem:[%s4248_s9 + $0x130] sm:$0xff] (%p3502_p6) }
 0x234   : > { %v2334_v40 = vadd.f32 %v2333_v36, %v2140_v63  ;;  %v2315_v41 = vpop.f32.mrf.mxu0  ;;  %2591 = vst [vmem:[%s4248_s9 + $0x398] sm:$0xff] %v2332_v33  ;;  %v2657_v63 = vld [vmem:[%s4248_s9 + $0x70] sm:$0xff] (%p3502_p6)  ;;  %2698 = vst [vmem:[%s4717_s29 + $0x210] sm:$0xff] (%p3502_p6), %v2697_v25  ;;  %v2707_v33 = vld [vmem:[%s4248_s9 + $0x138] sm:$0xff] (%p3502_p6) }
 0x235   : > { %v2335_v47 = vpop.f32.mrf.mxu1  ;;  %v2316_v51 = vadd.f32 %v2315_v41, %v4646_v3  ;;  %2578 = vst [vmem:[%s4248_s9 + $0x330] sm:$0xff] %v2314_v37  ;;  %2658 = vst [vmem:[%s4717_s29 + $0xd0] sm:$0xff] (%p3502_p6), %v2657_v63  ;;  %v2709_v34 = vld [vmem:[%s4248_s9 + $0x140] sm:$0xff] (%p3502_p6)  ;;  %v2711_v36 = vld [vmem:[%s4248_s9 + $0x148] sm:$0xff] (%p3502_p6) }
 0x236   : > { %v2336_v56 = vadd.f32 %v2335_v47, %v2142_v7  ;;  %v2319_v58 = vpop.f32.mrf.mxu0  ;;  %2594 = vst [vmem:[%s4248_s9 + $0x3b0] sm:$0xff] %v2334_v40  ;;  %v2663_v7 = vld [vmem:[%s4248_s9 + $0x88] sm:$0xff] (%p3502_p6)  ;;  %2700 = vst [vmem:[%s4717_s29 + $0x218] sm:$0xff] (%p3502_p6), %v2699_v26  ;;  %v2713_v37 = vld [vmem:[%s4248_s9 + $0x150] sm:$0xff] (%p3502_p6) }
 0x237   : > { %v2339_v30 = vpop.f32.mrf.mxu1  ;;  %v2320_v1 = vadd.f32 %v2319_v58, %v4650_v35  ;;  %2579 = vst [vmem:[%s4248_s9 + $0x338] sm:$0xff] %v2316_v51  ;;  %2664 = vst [vmem:[%s4717_s29 + $0x108] sm:$0xff] (%p3502_p6), %v2663_v7  ;;  %v2715_v40 = vld [vmem:[%s4248_s9 + $0x158] sm:$0xff] (%p3502_p6)  ;;  %v2717_v41 = vld [vmem:[%s4248_s9 + $0x160] sm:$0xff] (%p3502_p6) }
 0x238   : > { %v2340_v4 = vadd.f32 %v2339_v30, %v2146_v46  ;;  %v2321_v5 = vpop.f32.mrf.mxu0  ;;  %2595 = vst [vmem:[%s4248_s9 + $0x3b8] sm:$0xff] %v2336_v56  ;;  %v2669_v46 = vld [vmem:[%s4248_s9 + $0xa0] sm:$0xff] (%p3502_p6)  ;;  %2702 = vst [vmem:[%s4717_s29 + $0x240] sm:$0xff] (%p3502_p6), %v2701_v28  ;;  %v2719_v47 = vld [vmem:[%s4248_s9 + $0x168] sm:$0xff] (%p3502_p6) }
 0x239   : > { %v2341_v13 = vpop.f32.mrf.mxu1  ;;  %v2322_v6 = vadd.f32 %v2321_v5, %v4654_v48  ;;  %2582 = vst [vmem:[%s4248_s9 + $0x350] sm:$0xff] %v2320_v1  ;;  %v2629_v48 = vld [vmem:[%s4248_s9] sm:$0xff] (%p3502_p6)  ;;  %2670 = vst [vmem:[%s4717_s29 + $0x140] sm:$0xff] (%p3502_p6), %v2669_v46  ;;  %v2721_v51 = vld [vmem:[%s4248_s9 + $0x170] sm:$0xff] (%p3502_p6) }
 0x23a   : > { %v2342_v38 = vadd.f32 %v2341_v13, %v2148_v11  ;;  %v2323_v43 = vpop.f32.mrf.mxu0  ;;  %2598 = vst [vmem:[%s4248_s9 + $0x3d0] sm:$0xff] %v2340_v4  ;;  %2630 = vst [vmem:[%s4717_s29] sm:$0xff] (%p3502_p6), %v2629_v48  ;;  %v2675_v11 = vld [vmem:[%s4248_s9 + $0xb8] sm:$0xff] (%p3502_p6)  ;;  %v2725_v58 = vld [vmem:[%s4248_s9 + $0x180] sm:$0xff] (%p3502_p6) }
 0x23b   : > { %v2343_v3 = vpop.f32.mrf.mxu1  ;;  %v2324_v12 = vadd.f32 %v2323_v43, %v4658_v50  ;;  %2583 = vst [vmem:[%s4248_s9 + $0x358] sm:$0xff] %v2322_v6  ;;  %v2633_v50 = vld [vmem:[%s4248_s9 + $0x10] sm:$0xff] (%p3502_p6)  ;;  %2676 = vst [vmem:[%s4717_s29 + $0x158] sm:$0xff] (%p3502_p6), %v2675_v11  ;;  %v2723_v56 = vld [vmem:[%s4248_s9 + $0x178] sm:$0xff] (%p3502_p6) }
 0x23c   : > { %v2344_v22 = vadd.f32 %v2343_v3, %v2150_v16  ;;  %v2325_v35 = vpop.f32.mrf.mxu0  ;;  %2599 = vst [vmem:[%s4248_s9 + $0x3d8] sm:$0xff] %v2342_v38  ;;  %2610 = sbr.rel (!%p3502_p6) target bundleno = 617 (0x269), region = 59  ;;  %2634 = vst [vmem:[%s4717_s29 + $0x10] sm:$0xff] (%p3502_p6), %v2633_v50  ;;  %v2681_v16 = vld [vmem:[%s4248_s9 + $0xd0] sm:$0xff] (%p3502_p6)  ;;  %v2727_v30 = vld [vmem:[%s4248_s9 + $0x188] sm:$0xff] (%p3502_p6) }
 0x23d   : > { %v2345_v44 = vpop.f32.mrf.mxu1  ;;  %v2326_v45 = vadd.f32 %v2325_v35, %v4662_v54  ;;  %2586 = vst [vmem:[%s4248_s9 + $0x370] sm:$0xff] %v2324_v12  ;;  %v2639_v54 = vld [vmem:[%s4248_s9 + $0x28] sm:$0xff] (%p3502_p6)  ;;  %2682 = vst [vmem:[%s4717_s29 + $0x190] sm:$0xff] (%p3502_p6), %v2681_v16  ;;  %v2729_v1 = vld [vmem:[%s4248_s9 + $0x190] sm:$0xff] (%p3502_p6) }
 0x23e   : > { %v2346_v31 = vadd.f32 %v2345_v44, %v2152_v19  ;;  %2602 = vst [vmem:[%s4248_s9 + $0x3f0] sm:$0xff] %v2344_v22  ;;  %2640 = vst [vmem:[%s4717_s29 + $0x48] sm:$0xff] (%p3502_p6), %v2639_v54  ;;  %v2687_v19 = vld [vmem:[%s4248_s9 + $0xe8] sm:$0xff] (%p3502_p6)  ;;  %v2731_v4 = vld [vmem:[%s4248_s9 + $0x198] sm:$0xff] (%p3502_p6) }
 0x23f   : > { %2587 = vst [vmem:[%s4248_s9 + $0x378] sm:$0xff] %v2326_v45  ;;  %2688 = vst [vmem:[%s4717_s29 + $0x1c8] sm:$0xff] (%p3502_p6), %v2687_v19  ;;  %v2733_v5 = vld [vmem:[%s4248_s9 + $0x1a0] sm:$0xff] (%p3502_p6)  ;;  %v2735_v13 = vld [vmem:[%s4248_s9 + $0x1a8] sm:$0xff] (%p3502_p6) }
 0x240   : > { %2603 = vst [vmem:[%s4248_s9 + $0x3f8] sm:$0xff] %v2346_v31  ;;  %2704 = vst [vmem:[%s4717_s29 + $0x248] sm:$0xff] (%p3502_p6), %v2703_v29  ;;  %v2737_v6 = vld [vmem:[%s4248_s9 + $0x1b0] sm:$0xff] (%p3502_p6)  ;;  %v2739_v38 = vld [vmem:[%s4248_s9 + $0x1b8] sm:$0xff] (%p3502_p6) }
 0x241   : > { %2706 = vst [vmem:[%s4717_s29 + $0x250] sm:$0xff] %v2705_v27  ;;  %2708 = vst [vmem:[%s4717_s29 + $0x258] sm:$0xff] %v2707_v33  ;;  %v2741_v43 = vld [vmem:[%s4248_s9 + $0x1c0] sm:$0xff]  ;;  %v2743_v3 = vld [vmem:[%s4248_s9 + $0x1c8] sm:$0xff] }
 0x242   : > { %2710 = vst [vmem:[%s4717_s29 + $0x280] sm:$0xff] %v2709_v34  ;;  %2712 = vst [vmem:[%s4717_s29 + $0x288] sm:$0xff] %v2711_v36  ;;  %v2745_v12 = vld [vmem:[%s4248_s9 + $0x1d0] sm:$0xff]  ;;  %v2747_v22 = vld [vmem:[%s4248_s9 + $0x1d8] sm:$0xff] }
 0x243   : > { %2714 = vst [vmem:[%s4717_s29 + $0x290] sm:$0xff] %v2713_v37  ;;  %2716 = vst [vmem:[%s4717_s29 + $0x298] sm:$0xff] %v2715_v40  ;;  %v2749_v35 = vld [vmem:[%s4248_s9 + $0x1e0] sm:$0xff]  ;;  %v2751_v44 = vld [vmem:[%s4248_s9 + $0x1e8] sm:$0xff] }
 0x244   : > { %2718 = vst [vmem:[%s4717_s29 + $0x2c0] sm:$0xff] %v2717_v41  ;;  %2720 = vst [vmem:[%s4717_s29 + $0x2c8] sm:$0xff] %v2719_v47  ;;  %v2753_v45 = vld [vmem:[%s4248_s9 + $0x1f0] sm:$0xff]  ;;  %v2755_v31 = vld [vmem:[%s4248_s9 + $0x1f8] sm:$0xff] }
 0x245   : > { %2722 = vst [vmem:[%s4717_s29 + $0x2d0] sm:$0xff] %v2721_v51  ;;  %2724 = vst [vmem:[%s4717_s29 + $0x2d8] sm:$0xff] %v2723_v56  ;;  %v2757_v48 = vld [vmem:[%s4248_s9 + $0x200] sm:$0xff]  ;;  %v2761_v50 = vld [vmem:[%s4248_s9 + $0x210] sm:$0xff] }
 0x246   : > { %2726 = vst [vmem:[%s4717_s29 + $0x300] sm:$0xff] %v2725_v58  ;;  %2728 = vst [vmem:[%s4717_s29 + $0x308] sm:$0xff] %v2727_v30  ;;  %v2767_v54 = vld [vmem:[%s4248_s9 + $0x228] sm:$0xff]  ;;  %v2773_v55 = vld [vmem:[%s4248_s9 + $0x240] sm:$0xff] }
 0x247   : > { %2730 = vst [vmem:[%s4717_s29 + $0x310] sm:$0xff] %v2729_v1  ;;  %2732 = vst [vmem:[%s4717_s29 + $0x318] sm:$0xff] %v2731_v4  ;;  %v2779_v32 = vld [vmem:[%s4248_s9 + $0x258] sm:$0xff]  ;;  %v2785_v63 = vld [vmem:[%s4248_s9 + $0x270] sm:$0xff] }
 0x248   : > { %2734 = vst [vmem:[%s4717_s29 + $0x340] sm:$0xff] %v2733_v5  ;;  %2736 = vst [vmem:[%s4717_s29 + $0x348] sm:$0xff] %v2735_v13  ;;  %v2791_v7 = vld [vmem:[%s4248_s9 + $0x288] sm:$0xff]  ;;  %v2797_v46 = vld [vmem:[%s4248_s9 + $0x2a0] sm:$0xff] }
 0x249   : > { %2738 = vst [vmem:[%s4717_s29 + $0x350] sm:$0xff] %v2737_v6  ;;  %2740 = vst [vmem:[%s4717_s29 + $0x358] sm:$0xff] %v2739_v38  ;;  %v2803_v11 = vld [vmem:[%s4248_s9 + $0x2b8] sm:$0xff]  ;;  %v2809_v16 = vld [vmem:[%s4248_s9 + $0x2d0] sm:$0xff] }
 0x24a   : > { %2742 = vst [vmem:[%s4717_s29 + $0x380] sm:$0xff] %v2741_v43  ;;  %2744 = vst [vmem:[%s4717_s29 + $0x388] sm:$0xff] %v2743_v3  ;;  %v2811_v17 = vld [vmem:[%s4248_s9 + $0x2d8] sm:$0xff]  ;;  %v2815_v19 = vld [vmem:[%s4248_s9 + $0x2e8] sm:$0xff] }
 0x24b   : > { %2746 = vst [vmem:[%s4717_s29 + $0x390] sm:$0xff] %v2745_v12  ;;  %2748 = vst [vmem:[%s4717_s29 + $0x398] sm:$0xff] %v2747_v22  ;;  %v2817_v20 = vld [vmem:[%s4248_s9 + $0x2f0] sm:$0xff]  ;;  %v2819_v21 = vld [vmem:[%s4248_s9 + $0x2f8] sm:$0xff] }
 0x24c   : > { %2750 = vst [vmem:[%s4717_s29 + $0x3c0] sm:$0xff] %v2749_v35  ;;  %2752 = vst [vmem:[%s4717_s29 + $0x3c8] sm:$0xff] %v2751_v44  ;;  %v2821_v23 = vld [vmem:[%s4248_s9 + $0x300] sm:$0xff]  ;;  %v2823_v24 = vld [vmem:[%s4248_s9 + $0x308] sm:$0xff] }
 0x24d   : > { %2754 = vst [vmem:[%s4717_s29 + $0x3d0] sm:$0xff] %v2753_v45  ;;  %2756 = vst [vmem:[%s4717_s29 + $0x3d8] sm:$0xff] %v2755_v31  ;;  %v2825_v25 = vld [vmem:[%s4248_s9 + $0x310] sm:$0xff]  ;;  %v2827_v26 = vld [vmem:[%s4248_s9 + $0x318] sm:$0xff] }
 0x24e   : > { %2758 = vst [vmem:[%s4717_s29 + $0x400] sm:$0xff] %v2757_v48  ;;  %2762 = vst [vmem:[%s4717_s29 + $0x410] sm:$0xff] %v2761_v50  ;;  %v2829_v28 = vld [vmem:[%s4248_s9 + $0x320] sm:$0xff]  ;;  %v2831_v29 = vld [vmem:[%s4248_s9 + $0x328] sm:$0xff] }
 0x24f   : > { %2768 = vst [vmem:[%s4717_s29 + $0x448] sm:$0xff] %v2767_v54  ;;  %2774 = vst [vmem:[%s4717_s29 + $0x480] sm:$0xff] %v2773_v55  ;;  %v2833_v27 = vld [vmem:[%s4248_s9 + $0x330] sm:$0xff]  ;;  %v2835_v33 = vld [vmem:[%s4248_s9 + $0x338] sm:$0xff] }
 0x250   : > { %2780 = vst [vmem:[%s4717_s29 + $0x498] sm:$0xff] %v2779_v32  ;;  %2786 = vst [vmem:[%s4717_s29 + $0x4d0] sm:$0xff] %v2785_v63  ;;  %v2837_v34 = vld [vmem:[%s4248_s9 + $0x340] sm:$0xff]  ;;  %v2839_v36 = vld [vmem:[%s4248_s9 + $0x348] sm:$0xff] }
 0x251   : > { %2790 = vst [vmem:[%s4717_s29 + $0x500] sm:$0xff] %v2789_v2  ;;  %2792 = vst [vmem:[%s4717_s29 + $0x508] sm:$0xff] %v2791_v7  ;;  %v2841_v37 = vld [vmem:[%s4248_s9 + $0x350] sm:$0xff]  ;;  %v2843_v40 = vld [vmem:[%s4248_s9 + $0x358] sm:$0xff] }
 0x252   : > { %2794 = vst [vmem:[%s4717_s29 + $0x510] sm:$0xff] %v2793_v8  ;;  %2796 = vst [vmem:[%s4717_s29 + $0x518] sm:$0xff] %v2795_v9  ;;  %v2845_v41 = vld [vmem:[%s4248_s9 + $0x360] sm:$0xff]  ;;  %v2847_v47 = vld [vmem:[%s4248_s9 + $0x368] sm:$0xff] }
 0x253   : > { %2798 = vst [vmem:[%s4717_s29 + $0x540] sm:$0xff] %v2797_v46  ;;  %2800 = vst [vmem:[%s4717_s29 + $0x548] sm:$0xff] %v2799_v10  ;;  %v2849_v51 = vld [vmem:[%s4248_s9 + $0x370] sm:$0xff]  ;;  %v2851_v56 = vld [vmem:[%s4248_s9 + $0x378] sm:$0xff] }
 0x254   : > { %2802 = vst [vmem:[%s4717_s29 + $0x550] sm:$0xff] %v2801_v62  ;;  %2804 = vst [vmem:[%s4717_s29 + $0x558] sm:$0xff] %v2803_v11  ;;  %v2853_v58 = vld [vmem:[%s4248_s9 + $0x380] sm:$0xff]  ;;  %v2855_v30 = vld [vmem:[%s4248_s9 + $0x388] sm:$0xff] }
 0x255   : > { %2806 = vst [vmem:[%s4717_s29 + $0x580] sm:$0xff] %v2805_v14  ;;  %2808 = vst [vmem:[%s4717_s29 + $0x588] sm:$0xff] %v2807_v15  ;;  %v2857_v1 = vld [vmem:[%s4248_s9 + $0x390] sm:$0xff]  ;;  %v2859_v4 = vld [vmem:[%s4248_s9 + $0x398] sm:$0xff] }
 0x256   : > { %2810 = vst [vmem:[%s4717_s29 + $0x590] sm:$0xff] %v2809_v16  ;;  %2812 = vst [vmem:[%s4717_s29 + $0x598] sm:$0xff] %v2811_v17  ;;  %v2861_v5 = vld [vmem:[%s4248_s9 + $0x3a0] sm:$0xff]  ;;  %v2863_v13 = vld [vmem:[%s4248_s9 + $0x3a8] sm:$0xff] }
 0x257   : > { %2814 = vst [vmem:[%s4717_s29 + $0x5c0] sm:$0xff] %v2813_v18  ;;  %2816 = vst [vmem:[%s4717_s29 + $0x5c8] sm:$0xff] %v2815_v19  ;;  %v2865_v6 = vld [vmem:[%s4248_s9 + $0x3b0] sm:$0xff]  ;;  %v2867_v38 = vld [vmem:[%s4248_s9 + $0x3b8] sm:$0xff] }
 0x258   : > { %2818 = vst [vmem:[%s4717_s29 + $0x5d0] sm:$0xff] %v2817_v20  ;;  %2820 = vst [vmem:[%s4717_s29 + $0x5d8] sm:$0xff] %v2819_v21  ;;  %v2869_v43 = vld [vmem:[%s4248_s9 + $0x3c0] sm:$0xff]  ;;  %v2871_v3 = vld [vmem:[%s4248_s9 + $0x3c8] sm:$0xff] }
 0x259   : > { %2822 = vst [vmem:[%s4717_s29 + $0x600] sm:$0xff] %v2821_v23  ;;  %2824 = vst [vmem:[%s4717_s29 + $0x608] sm:$0xff] %v2823_v24  ;;  %v2873_v12 = vld [vmem:[%s4248_s9 + $0x3d0] sm:$0xff]  ;;  %v2875_v22 = vld [vmem:[%s4248_s9 + $0x3d8] sm:$0xff] }
 0x25a   : > { %2826 = vst [vmem:[%s4717_s29 + $0x610] sm:$0xff] %v2825_v25  ;;  %2828 = vst [vmem:[%s4717_s29 + $0x618] sm:$0xff] %v2827_v26  ;;  %v2877_v35 = vld [vmem:[%s4248_s9 + $0x3e0] sm:$0xff]  ;;  %v2879_v44 = vld [vmem:[%s4248_s9 + $0x3e8] sm:$0xff] }
 0x25b   : > { %2830 = vst [vmem:[%s4717_s29 + $0x640] sm:$0xff] %v2829_v28  ;;  %2832 = vst [vmem:[%s4717_s29 + $0x648] sm:$0xff] %v2831_v29  ;;  %v2881_v45 = vld [vmem:[%s4248_s9 + $0x3f0] sm:$0xff]  ;;  %v2883_v31 = vld [vmem:[%s4248_s9 + $0x3f8] sm:$0xff] }
 0x25c   : > { %2834 = vst [vmem:[%s4717_s29 + $0x650] sm:$0xff] %v2833_v27  ;;  %2836 = vst [vmem:[%s4717_s29 + $0x658] sm:$0xff] %v2835_v33 }
 0x25d   : > { %2838 = vst [vmem:[%s4717_s29 + $0x680] sm:$0xff] %v2837_v34  ;;  %2840 = vst [vmem:[%s4717_s29 + $0x688] sm:$0xff] %v2839_v36 }
 0x25e   : > { %2842 = vst [vmem:[%s4717_s29 + $0x690] sm:$0xff] %v2841_v37  ;;  %2844 = vst [vmem:[%s4717_s29 + $0x698] sm:$0xff] %v2843_v40 }
 0x25f   : > { %2846 = vst [vmem:[%s4717_s29 + $0x6c0] sm:$0xff] %v2845_v41  ;;  %2848 = vst [vmem:[%s4717_s29 + $0x6c8] sm:$0xff] %v2847_v47 }
 0x260   : > { %2850 = vst [vmem:[%s4717_s29 + $0x6d0] sm:$0xff] %v2849_v51  ;;  %2852 = vst [vmem:[%s4717_s29 + $0x6d8] sm:$0xff] %v2851_v56 }
 0x261   : > { %2854 = vst [vmem:[%s4717_s29 + $0x700] sm:$0xff] %v2853_v58  ;;  %2856 = vst [vmem:[%s4717_s29 + $0x708] sm:$0xff] %v2855_v30 }
 0x262   : > { %2858 = vst [vmem:[%s4717_s29 + $0x710] sm:$0xff] %v2857_v1  ;;  %2860 = vst [vmem:[%s4717_s29 + $0x718] sm:$0xff] %v2859_v4 }
 0x263   : > { %2862 = vst [vmem:[%s4717_s29 + $0x740] sm:$0xff] %v2861_v5  ;;  %2864 = vst [vmem:[%s4717_s29 + $0x748] sm:$0xff] %v2863_v13 }
 0x264   : > { %2866 = vst [vmem:[%s4717_s29 + $0x750] sm:$0xff] %v2865_v6  ;;  %2868 = vst [vmem:[%s4717_s29 + $0x758] sm:$0xff] %v2867_v38 }
 0x265   : > { %2870 = vst [vmem:[%s4717_s29 + $0x780] sm:$0xff] %v2869_v43  ;;  %2872 = vst [vmem:[%s4717_s29 + $0x788] sm:$0xff] %v2871_v3 }
 0x266   : > { %2874 = vst [vmem:[%s4717_s29 + $0x790] sm:$0xff] %v2873_v12  ;;  %2876 = vst [vmem:[%s4717_s29 + $0x798] sm:$0xff] %v2875_v22 }
 0x267   : > { %2878 = vst [vmem:[%s4717_s29 + $0x7c0] sm:$0xff] %v2877_v35  ;;  %2880 = vst [vmem:[%s4717_s29 + $0x7c8] sm:$0xff] %v2879_v44 }
 0x268   : > { %2882 = vst [vmem:[%s4717_s29 + $0x7d0] sm:$0xff] %v2881_v45  ;;  %2884 = vst [vmem:[%s4717_s29 + $0x7d8] sm:$0xff] %v2883_v31 }
 0x269 PF: > { %s12_s13 = sadd.s32 1, %s3449_s13   ;;  %s4991_s9 = smov %s3437_s10 }
 0x26a   : > { %p9_p11 = scmp.ge.s32.totalorder %s12_s13, 4   ;;  %s4992_s10 = smov %s3507_s19 }
 0x26b   : > { %s4993_s11 = smov %s3445_s12  ;;  %s4994_s12 = smov %s4996_s14 }
 0x26c   :  { %11 = sbr.rel (!%p9_p11) target bundleno = 3 (0x3), region = 116 }

</bundles_post_ra>
